<compile_context>
chip_gen: v7x
topology: tpu7x:2x2x1
jax: 0.10.0
libtpu: 0.0.40
codegen_flags: <defaults>
</compile_context>

<pallas_src>
import functools

import jax
import jax.numpy as jnp
from jax.experimental import pallas as pl
from jax.experimental.pallas import tpu as pltpu


def block_kernel(x_ref, w1_ref, b1_ref, w2_ref, b2_ref,
                 caw1_ref, cab1_ref, caw2_ref, cab2_ref,
                 paw1_ref, pab1_ref, paw2_ref, pab2_ref,
                 mask_l_ref, mask_r_ref, out_ref, *, spatial_w):
    _, C, HW = x_ref.shape
    W = spatial_w
    # Lane-aligned zero halo, long enough that a +-(W+1) lane shift of the
    # image stays inside the padded buffer and reads zeros above/below it.
    PAD = ((W + 1 + 127) // 128) * 128

    x0 = x_ref[0].astype(jnp.float32)          # (C, HW) lane-dense load
    mask_l = mask_l_ref[...]                   # (1, HW): 0 where w == 0
    mask_r = mask_r_ref[...]                   # (1, HW): 0 where w == W-1
    zpad = jnp.zeros((C, PAD), jnp.float32)

    def conv3x3(src, w_ref, b_ref):
        # src: (C, HW).  Same-padding 3x3 conv as a single K=9*C matmul over
        # an im2col patch built from lane-shifted slices of the padded image.
        xp = jnp.concatenate([zpad, src, zpad], axis=1)   # (C, PAD+HW+PAD)
        taps = []
        for dh in (-1, 0, 1):
            for dw in (-1, 0, 1):
                start = PAD + dh * W + dw
                t = xp[:, start:start + HW]               # shifted image
                if dw == -1:
                    t = t * mask_l                        # kill width wrap
                elif dw == 1:
                    t = t * mask_r
                taps.append(t)
        patch = jnp.concatenate(taps, axis=0)             # (9*C, HW)
        return jnp.dot(w_ref[...], patch,
                       preferred_element_type=jnp.float32) + b_ref[...]

    # conv1 -> ReLU -> + skip
    r = jnp.maximum(conv3x3(x0, w1_ref, b1_ref), 0.0) + x0

    # conv2
    r = conv3x3(r, w2_ref, b2_ref)

    # CALayer: GAP -> 1x1 -> ReLU -> 1x1 -> sigmoid -> per-channel scale.
    # Tiny projections on VPU/XLU (M=1 matmuls would waste whole MXU passes).
    gap = jnp.mean(r, axis=1, keepdims=True)                                  # (C, 1)
    y = jnp.sum(gap * caw1_ref[...], axis=0, keepdims=True) + cab1_ref[...]   # (1, cr)
    y = jnp.maximum(y, 0.0)
    y = jnp.sum(y * caw2_ref[...], axis=1, keepdims=True) + cab2_ref[...]     # (C, 1)
    y = jax.nn.sigmoid(y)
    r = r * y

    # PALayer: 1x1 -> ReLU -> 1x1 (cr -> 1) -> sigmoid -> per-pixel scale.
    p = jnp.dot(paw1_ref[...], r,
                preferred_element_type=jnp.float32) + pab1_ref[...]           # (cr, HW)
    p = jnp.maximum(p, 0.0)
    p = jnp.sum(p * paw2_ref[...], axis=0, keepdims=True) + pab2_ref[...]     # (1, HW)
    p = jax.nn.sigmoid(p)
    r = r * p

    out_ref[0] = (r + x0).astype(out_ref.dtype)            # lane-dense store


def block_forward(x, params):
    """x = (x0, x1) with x0, x1 in NCHW like the PyTorch module.

    params (PyTorch layouts, 1x1-conv weights squeezed to 2D (out, in)):
      w1 (C,C,3,3), b1 (C,), w2 (C,C,3,3), b2 (C,),
      caw1 (C//8, C), cab1 (C//8,), caw2 (C, C//8), cab2 (C,),
      paw1 (C//8, C), pab1 (C//8,), paw2 (1, C//8), pab2 (1,)
    Returns (res, x1).
    """
    x0, x1 = x
    N, C, H, W = x0.shape
    HW = H * W
    (w1, b1, w2, b2, caw1, cab1, caw2, cab2, paw1, pab1, paw2, pab2) = params
    cr = caw1.shape[0]

    # Kernel-side layouts.
    w1m = jnp.transpose(w1, (0, 2, 3, 1)).reshape(C, 9 * C)   # [co, (kh,kw,ci)]
    w2m = jnp.transpose(w2, (0, 2, 3, 1)).reshape(C, 9 * C)
    kparams = (
        w1m, b1.reshape(C, 1),
        w2m, b2.reshape(C, 1),
        caw1.T, cab1.reshape(1, cr),            # (C, cr), (1, cr)
        caw2, cab2.reshape(C, 1),               # (C, cr), (C, 1)
        paw1, pab1.reshape(cr, 1),              # (cr, C), (cr, 1)
        paw2.reshape(cr, 1), pab2.reshape(1, 1),
    )

    # Width-boundary validity masks for the flattened spatial axis.
    w_idx = jnp.arange(HW, dtype=jnp.int32) % W
    mask_l = (w_idx > 0).astype(jnp.float32).reshape(1, HW)
    mask_r = (w_idx < W - 1).astype(jnp.float32).reshape(1, HW)

    inputs = (x0.reshape(N, C, HW),) + kparams + (mask_l, mask_r)

    def full_spec(a):
        return pl.BlockSpec(a.shape, lambda n, _nd=a.ndim: (0,) * _nd)

    # NOTE: at real FFA-Net resolutions (e.g. 240x240x64) add a second grid
    # axis over H with a 1-row halo so each block fits v7x's 64 MiB VMEM; the
    # demo image fits whole.
    res = pl.pallas_call(
        functools.partial(block_kernel, spatial_w=W),
        out_shape=jax.ShapeDtypeStruct((N, C, HW), x0.dtype),
        grid=(N,),
        in_specs=[pl.BlockSpec((1, C, HW), lambda n: (n, 0, 0))]
                 + [full_spec(a) for a in inputs[1:]],
        out_specs=pl.BlockSpec((1, C, HW), lambda n: (n, 0, 0)),
        compiler_params=pltpu.CompilerParams(
            dimension_semantics=("parallel",),
            vmem_limit_bytes=32 * 1024 * 1024),
    )(*inputs)
    return res.reshape(N, C, H, W), x1


def ref_block(x0, params):
    """Pure-JAX reference mirroring the PyTorch forward (NCHW / OIHW)."""
    (w1, b1, w2, b2, caw1, cab1, caw2, cab2, paw1, pab1, paw2, pab2) = params

    def conv3(x, w, b):
        y = jax.lax.conv_general_dilated(
            x, w, (1, 1), "SAME",
            dimension_numbers=("NCHW", "OIHW", "NCHW"),
            precision=jax.lax.Precision.HIGHEST)
        return y + b.reshape(1, -1, 1, 1)

    def conv1x1(x, w, b):
        y = jnp.einsum("nchw,oc->nohw", x, w,
                       precision=jax.lax.Precision.HIGHEST)
        return y + b.reshape(1, -1, 1, 1)

    r = jax.nn.relu(conv3(x0, w1, b1)) + x0
    r = conv3(r, w2, b2)
    # CALayer
    y = jnp.mean(r, axis=(2, 3), keepdims=True)
    y = jax.nn.relu(conv1x1(y, caw1, cab1))
    y = jax.nn.sigmoid(conv1x1(y, caw2, cab2))
    r = r * y
    # PALayer
    p = jax.nn.relu(conv1x1(r, paw1, pab1))
    p = jax.nn.sigmoid(conv1x1(p, paw2, pab2))
    r = r * p
    return r + x0


if __name__ == "__main__":
    N, dim, H, W = 2, 16, 16, 16          # dim must be a multiple of 8 (dim // 8 squeeze)
    cr = dim // 8

    key = jax.random.PRNGKey(0)
    ks = jax.random.split(key, 16)
    s = 0.1
    params = (
        jax.random.normal(ks[0], (dim, dim, 3, 3), jnp.float32) * s,   # conv1 w (OIHW)
        jax.random.normal(ks[1], (dim,), jnp.float32) * s,             # conv1 b
        jax.random.normal(ks[2], (dim, dim, 3, 3), jnp.float32) * s,   # conv2 w
        jax.random.normal(ks[3], (dim,), jnp.float32) * s,             # conv2 b
        jax.random.normal(ks[4], (cr, dim), jnp.float32) * s,          # CA 1x1 w1 (out,in)
        jax.random.normal(ks[5], (cr,), jnp.float32) * s,              # CA b1
        jax.random.normal(ks[6], (dim, cr), jnp.float32) * s,          # CA 1x1 w2
        jax.random.normal(ks[7], (dim,), jnp.float32) * s,             # CA b2
        jax.random.normal(ks[8], (cr, dim), jnp.float32) * s,          # PA 1x1 w1
        jax.random.normal(ks[9], (cr,), jnp.float32) * s,              # PA b1
        jax.random.normal(ks[10], (1, cr), jnp.float32) * s,           # PA 1x1 w2
        jax.random.normal(ks[11], (1,), jnp.float32) * s,              # PA b2
    )

    x0 = jax.random.normal(ks[12], (N, dim, H, W), jnp.float32)
    x1 = jax.random.normal(ks[13], (N, dim, H, W), jnp.float32)

    res, passthrough = block_forward((x0, x1), params)
    res = jax.block_until_ready(res)

    ref = ref_block(x0, params)
    max_err = float(jnp.max(jnp.abs(res - ref)))
    assert jnp.allclose(res, ref, atol=2e-3, rtol=2e-3), max_err
    assert jnp.array_equal(passthrough, x1)

    print("KERNEL_OK")
</pallas_src>

<mosaic_0001>
module attributes {stable_mosaic.version = 11 : i64} {
  func.func @block_kernel(%arg0: i32, %arg1: memref<1x16x256xf32, #tpu.memory_space<vmem>>, %arg2: memref<16x144xf32, #tpu.memory_space<vmem>>, %arg3: memref<16x1xf32, #tpu.memory_space<vmem>>, %arg4: memref<16x144xf32, #tpu.memory_space<vmem>>, %arg5: memref<16x1xf32, #tpu.memory_space<vmem>>, %arg6: memref<16x2xf32, #tpu.memory_space<vmem>>, %arg7: memref<1x2xf32, #tpu.memory_space<vmem>>, %arg8: memref<16x2xf32, #tpu.memory_space<vmem>>, %arg9: memref<16x1xf32, #tpu.memory_space<vmem>>, %arg10: memref<2x16xf32, #tpu.memory_space<vmem>>, %arg11: memref<2x1xf32, #tpu.memory_space<vmem>>, %arg12: memref<2x1xf32, #tpu.memory_space<vmem>>, %arg13: memref<1x1xf32, #tpu.memory_space<vmem>>, %arg14: memref<1x256xf32, #tpu.memory_space<vmem>>, %arg15: memref<1x256xf32, #tpu.memory_space<vmem>>, %arg16: memref<1x16x256xf32, #tpu.memory_space<vmem>>) attributes {dimension_semantics = [#tpu.dimension_semantics<parallel>], iteration_bounds = array<i64: 2>, scalar_prefetch = 0 : i64, scratch_operands = 0 : i64, tpu.core_type = #tpu.core_type<tc>, window_params = [{transform_indices = @transform_0, window_bounds = array<i64: 1, 16, 256>}, {pipeline_mode = #tpu.pipeline_mode<synchronous>, transform_indices = @transform_1, window_bounds = array<i64: 16, 144>}, {pipeline_mode = #tpu.pipeline_mode<synchronous>, transform_indices = @transform_2, window_bounds = array<i64: 16, 1>}, {pipeline_mode = #tpu.pipeline_mode<synchronous>, transform_indices = @transform_3, window_bounds = array<i64: 16, 144>}, {pipeline_mode = #tpu.pipeline_mode<synchronous>, transform_indices = @transform_4, window_bounds = array<i64: 16, 1>}, {pipeline_mode = #tpu.pipeline_mode<synchronous>, transform_indices = @transform_5, window_bounds = array<i64: 16, 2>}, {pipeline_mode = #tpu.pipeline_mode<synchronous>, transform_indices = @transform_6, window_bounds = array<i64: 1, 2>}, {pipeline_mode = #tpu.pipeline_mode<synchronous>, transform_indices = @transform_7, window_bounds = array<i64: 16, 2>}, {pipeline_mode = #tpu.pipeline_mode<synchronous>, transform_indices = @transform_8, window_bounds = array<i64: 16, 1>}, {pipeline_mode = #tpu.pipeline_mode<synchronous>, transform_indices = @transform_9, window_bounds = array<i64: 2, 16>}, {pipeline_mode = #tpu.pipeline_mode<synchronous>, transform_indices = @transform_10, window_bounds = array<i64: 2, 1>}, {pipeline_mode = #tpu.pipeline_mode<synchronous>, transform_indices = @transform_11, window_bounds = array<i64: 2, 1>}, {pipeline_mode = #tpu.pipeline_mode<synchronous>, transform_indices = @transform_12, window_bounds = array<i64: 1, 1>}, {pipeline_mode = #tpu.pipeline_mode<synchronous>, transform_indices = @transform_13, window_bounds = array<i64: 1, 256>}, {pipeline_mode = #tpu.pipeline_mode<synchronous>, transform_indices = @transform_14, window_bounds = array<i64: 1, 256>}, {transform_indices = @transform_15, window_bounds = array<i64: 1, 16, 256>}]} {
    %c0 = arith.constant 0 : index
    %c0_0 = arith.constant 0 : index
    %c0_1 = arith.constant 0 : index
    %0 = vector.load %arg1[%c0, %c0_0, %c0_1] : memref<1x16x256xf32, #tpu.memory_space<vmem>>, vector<1x16x256xf32>
    %1 = vector.shape_cast %0 : vector<1x16x256xf32> to vector<16x256xf32>
    %c0_2 = arith.constant 0 : index
    %c0_3 = arith.constant 0 : index
    %2 = vector.load %arg14[%c0_2, %c0_3] : memref<1x256xf32, #tpu.memory_space<vmem>>, vector<1x256xf32>
    %c0_4 = arith.constant 0 : index
    %c0_5 = arith.constant 0 : index
    %3 = vector.load %arg15[%c0_4, %c0_5] : memref<1x256xf32, #tpu.memory_space<vmem>>, vector<1x256xf32>
    %cst = arith.constant 0.000000e+00 : f32
    %4 = vector.broadcast %cst : f32 to vector<16x128xf32>
    %5 = tpu.concatenate %4, %1, %4 in 1 : vector<16x128xf32>, vector<16x256xf32>, vector<16x128xf32> -> vector<16x512xf32>
    %6 = vector.extract_strided_slice %5 {offsets = [0, 111], sizes = [16, 256], strides = [1, 1]} : vector<16x512xf32> to vector<16x256xf32>
    %7 = vector.broadcast %2 : vector<1x256xf32> to vector<16x256xf32>
    %8 = arith.mulf %6, %7 : vector<16x256xf32>
    %9 = vector.extract_strided_slice %5 {offsets = [0, 112], sizes = [16, 256], strides = [1, 1]} : vector<16x512xf32> to vector<16x256xf32>
    %10 = vector.extract_strided_slice %5 {offsets = [0, 113], sizes = [16, 256], strides = [1, 1]} : vector<16x512xf32> to vector<16x256xf32>
    %11 = vector.broadcast %3 : vector<1x256xf32> to vector<16x256xf32>
    %12 = arith.mulf %10, %11 : vector<16x256xf32>
    %13 = vector.extract_strided_slice %5 {offsets = [0, 127], sizes = [16, 256], strides = [1, 1]} : vector<16x512xf32> to vector<16x256xf32>
    %14 = vector.broadcast %2 : vector<1x256xf32> to vector<16x256xf32>
    %15 = arith.mulf %13, %14 : vector<16x256xf32>
    %16 = vector.extract_strided_slice %5 {offsets = [0, 128], sizes = [16, 256], strides = [1, 1]} : vector<16x512xf32> to vector<16x256xf32>
    %17 = vector.extract_strided_slice %5 {offsets = [0, 129], sizes = [16, 256], strides = [1, 1]} : vector<16x512xf32> to vector<16x256xf32>
    %18 = vector.broadcast %3 : vector<1x256xf32> to vector<16x256xf32>
    %19 = arith.mulf %17, %18 : vector<16x256xf32>
    %20 = vector.extract_strided_slice %5 {offsets = [0, 143], sizes = [16, 256], strides = [1, 1]} : vector<16x512xf32> to vector<16x256xf32>
    %21 = vector.broadcast %2 : vector<1x256xf32> to vector<16x256xf32>
    %22 = arith.mulf %20, %21 : vector<16x256xf32>
    %23 = vector.extract_strided_slice %5 {offsets = [0, 144], sizes = [16, 256], strides = [1, 1]} : vector<16x512xf32> to vector<16x256xf32>
    %24 = vector.extract_strided_slice %5 {offsets = [0, 145], sizes = [16, 256], strides = [1, 1]} : vector<16x512xf32> to vector<16x256xf32>
    %25 = vector.broadcast %3 : vector<1x256xf32> to vector<16x256xf32>
    %26 = arith.mulf %24, %25 : vector<16x256xf32>
    %27 = tpu.concatenate %8, %9, %12, %15, %16, %19, %22, %23, %26 in 0 : vector<16x256xf32>, vector<16x256xf32>, vector<16x256xf32>, vector<16x256xf32>, vector<16x256xf32>, vector<16x256xf32>, vector<16x256xf32>, vector<16x256xf32>, vector<16x256xf32> -> vector<144x256xf32>
    %c0_6 = arith.constant 0 : index
    %c0_7 = arith.constant 0 : index
    %28 = vector.load %arg2[%c0_6, %c0_7] : memref<16x144xf32, #tpu.memory_space<vmem>>, vector<16x144xf32>
    %cst_8 = arith.constant dense<0.000000e+00> : vector<16x256xf32>
    %29 = tpu.matmul %28, %27, %cst_8 {dimension_numbers = #tpu.dot_dimension_numbers<[1], [0], [0], [1], [0, 0, 1, 1], [], []>} : vector<16x144xf32>, vector<144x256xf32>, vector<16x256xf32> -> vector<16x256xf32>
    %c0_9 = arith.constant 0 : index
    %c0_10 = arith.constant 0 : index
    %30 = vector.load %arg3[%c0_9, %c0_10] : memref<16x1xf32, #tpu.memory_space<vmem>>, vector<16x1xf32>
    %31 = vector.broadcast %30 : vector<16x1xf32> to vector<16x256xf32>
    %32 = arith.addf %29, %31 : vector<16x256xf32>
    %cst_11 = arith.constant 0.000000e+00 : f32
    %33 = vector.broadcast %cst_11 : f32 to vector<16x256xf32>
    %34 = arith.maximumf %32, %33 : vector<16x256xf32>
    %35 = arith.addf %34, %1 : vector<16x256xf32>
    %36 = tpu.concatenate %4, %35, %4 in 1 : vector<16x128xf32>, vector<16x256xf32>, vector<16x128xf32> -> vector<16x512xf32>
    %37 = vector.extract_strided_slice %36 {offsets = [0, 111], sizes = [16, 256], strides = [1, 1]} : vector<16x512xf32> to vector<16x256xf32>
    %38 = vector.broadcast %2 : vector<1x256xf32> to vector<16x256xf32>
    %39 = arith.mulf %37, %38 : vector<16x256xf32>
    %40 = vector.extract_strided_slice %36 {offsets = [0, 112], sizes = [16, 256], strides = [1, 1]} : vector<16x512xf32> to vector<16x256xf32>
    %41 = vector.extract_strided_slice %36 {offsets = [0, 113], sizes = [16, 256], strides = [1, 1]} : vector<16x512xf32> to vector<16x256xf32>
    %42 = vector.broadcast %3 : vector<1x256xf32> to vector<16x256xf32>
    %43 = arith.mulf %41, %42 : vector<16x256xf32>
    %44 = vector.extract_strided_slice %36 {offsets = [0, 127], sizes = [16, 256], strides = [1, 1]} : vector<16x512xf32> to vector<16x256xf32>
    %45 = vector.broadcast %2 : vector<1x256xf32> to vector<16x256xf32>
    %46 = arith.mulf %44, %45 : vector<16x256xf32>
    %47 = vector.extract_strided_slice %36 {offsets = [0, 128], sizes = [16, 256], strides = [1, 1]} : vector<16x512xf32> to vector<16x256xf32>
    %48 = vector.extract_strided_slice %36 {offsets = [0, 129], sizes = [16, 256], strides = [1, 1]} : vector<16x512xf32> to vector<16x256xf32>
    %49 = vector.broadcast %3 : vector<1x256xf32> to vector<16x256xf32>
    %50 = arith.mulf %48, %49 : vector<16x256xf32>
    %51 = vector.extract_strided_slice %36 {offsets = [0, 143], sizes = [16, 256], strides = [1, 1]} : vector<16x512xf32> to vector<16x256xf32>
    %52 = vector.broadcast %2 : vector<1x256xf32> to vector<16x256xf32>
    %53 = arith.mulf %51, %52 : vector<16x256xf32>
    %54 = vector.extract_strided_slice %36 {offsets = [0, 144], sizes = [16, 256], strides = [1, 1]} : vector<16x512xf32> to vector<16x256xf32>
    %55 = vector.extract_strided_slice %36 {offsets = [0, 145], sizes = [16, 256], strides = [1, 1]} : vector<16x512xf32> to vector<16x256xf32>
    %56 = vector.broadcast %3 : vector<1x256xf32> to vector<16x256xf32>
    %57 = arith.mulf %55, %56 : vector<16x256xf32>
    %58 = tpu.concatenate %39, %40, %43, %46, %47, %50, %53, %54, %57 in 0 : vector<16x256xf32>, vector<16x256xf32>, vector<16x256xf32>, vector<16x256xf32>, vector<16x256xf32>, vector<16x256xf32>, vector<16x256xf32>, vector<16x256xf32>, vector<16x256xf32> -> vector<144x256xf32>
    %c0_12 = arith.constant 0 : index
    %c0_13 = arith.constant 0 : index
    %59 = vector.load %arg4[%c0_12, %c0_13] : memref<16x144xf32, #tpu.memory_space<vmem>>, vector<16x144xf32>
    %cst_14 = arith.constant dense<0.000000e+00> : vector<16x256xf32>
    %60 = tpu.matmul %59, %58, %cst_14 {dimension_numbers = #tpu.dot_dimension_numbers<[1], [0], [0], [1], [0, 0, 1, 1], [], []>} : vector<16x144xf32>, vector<144x256xf32>, vector<16x256xf32> -> vector<16x256xf32>
    %c0_15 = arith.constant 0 : index
    %c0_16 = arith.constant 0 : index
    %61 = vector.load %arg5[%c0_15, %c0_16] : memref<16x1xf32, #tpu.memory_space<vmem>>, vector<16x1xf32>
    %62 = vector.broadcast %61 : vector<16x1xf32> to vector<16x256xf32>
    %63 = arith.addf %60, %62 : vector<16x256xf32>
    %cst_17 = arith.constant dense<0.000000e+00> : vector<16xf32>
    %64 = vector.multi_reduction <add>, %63, %cst_17 [1] : vector<16x256xf32> to vector<16xf32>
    %65 = vector.shape_cast %64 : vector<16xf32> to vector<16x1xf32>
    %cst_18 = arith.constant 2.560000e+02 : f32
    %66 = vector.broadcast %cst_18 : f32 to vector<16x1xf32>
    %67 = arith.divf %65, %66 : vector<16x1xf32>
    %c0_19 = arith.constant 0 : index
    %c0_20 = arith.constant 0 : index
    %68 = vector.load %arg6[%c0_19, %c0_20] : memref<16x2xf32, #tpu.memory_space<vmem>>, vector<16x2xf32>
    %69 = vector.broadcast %67 : vector<16x1xf32> to vector<16x2xf32>
    %70 = arith.mulf %69, %68 : vector<16x2xf32>
    %cst_21 = arith.constant dense<0.000000e+00> : vector<2xf32>
    %71 = vector.multi_reduction <add>, %70, %cst_21 [0] : vector<16x2xf32> to vector<2xf32>
    %72 = vector.shape_cast %71 : vector<2xf32> to vector<1x2xf32>
    %c0_22 = arith.constant 0 : index
    %c0_23 = arith.constant 0 : index
    %73 = vector.load %arg7[%c0_22, %c0_23] : memref<1x2xf32, #tpu.memory_space<vmem>>, vector<1x2xf32>
    %74 = arith.addf %72, %73 : vector<1x2xf32>
    %cst_24 = arith.constant 0.000000e+00 : f32
    %75 = vector.broadcast %cst_24 : f32 to vector<1x2xf32>
    %76 = arith.maximumf %74, %75 : vector<1x2xf32>
    %c0_25 = arith.constant 0 : index
    %c0_26 = arith.constant 0 : index
    %77 = vector.load %arg8[%c0_25, %c0_26] : memref<16x2xf32, #tpu.memory_space<vmem>>, vector<16x2xf32>
    %78 = vector.broadcast %76 : vector<1x2xf32> to vector<16x2xf32>
    %79 = arith.mulf %78, %77 : vector<16x2xf32>
    %cst_27 = arith.constant dense<0.000000e+00> : vector<16xf32>
    %80 = vector.multi_reduction <add>, %79, %cst_27 [1] : vector<16x2xf32> to vector<16xf32>
    %81 = vector.shape_cast %80 : vector<16xf32> to vector<16x1xf32>
    %c0_28 = arith.constant 0 : index
    %c0_29 = arith.constant 0 : index
    %82 = vector.load %arg9[%c0_28, %c0_29] : memref<16x1xf32, #tpu.memory_space<vmem>>, vector<16x1xf32>
    %83 = arith.addf %81, %82 : vector<16x1xf32>
    %84 = arith.negf %83 : vector<16x1xf32>
    %85 = math.exp %84 : vector<16x1xf32>
    %cst_30 = arith.constant 1.000000e+00 : f32
    %86 = vector.broadcast %cst_30 : f32 to vector<16x1xf32>
    %87 = arith.addf %86, %85 : vector<16x1xf32>
    %88 = arith.divf %86, %87 : vector<16x1xf32>
    %89 = vector.broadcast %88 : vector<16x1xf32> to vector<16x256xf32>
    %90 = arith.mulf %63, %89 : vector<16x256xf32>
    %c0_31 = arith.constant 0 : index
    %c0_32 = arith.constant 0 : index
    %91 = vector.load %arg10[%c0_31, %c0_32] : memref<2x16xf32, #tpu.memory_space<vmem>>, vector<2x16xf32>
    %cst_33 = arith.constant dense<0.000000e+00> : vector<2x256xf32>
    %92 = tpu.matmul %91, %90, %cst_33 {dimension_numbers = #tpu.dot_dimension_numbers<[1], [0], [0], [1], [0, 0, 1, 1], [], []>} : vector<2x16xf32>, vector<16x256xf32>, vector<2x256xf32> -> vector<2x256xf32>
    %c0_34 = arith.constant 0 : index
    %c0_35 = arith.constant 0 : index
    %93 = vector.load %arg11[%c0_34, %c0_35] : memref<2x1xf32, #tpu.memory_space<vmem>>, vector<2x1xf32>
    %94 = vector.broadcast %93 : vector<2x1xf32> to vector<2x256xf32>
    %95 = arith.addf %92, %94 : vector<2x256xf32>
    %cst_36 = arith.constant 0.000000e+00 : f32
    %96 = vector.broadcast %cst_36 : f32 to vector<2x256xf32>
    %97 = arith.maximumf %95, %96 : vector<2x256xf32>
    %c0_37 = arith.constant 0 : index
    %c0_38 = arith.constant 0 : index
    %98 = vector.load %arg12[%c0_37, %c0_38] : memref<2x1xf32, #tpu.memory_space<vmem>>, vector<2x1xf32>
    %99 = vector.broadcast %98 : vector<2x1xf32> to vector<2x256xf32>
    %100 = arith.mulf %97, %99 : vector<2x256xf32>
    %cst_39 = arith.constant dense<0.000000e+00> : vector<256xf32>
    %101 = vector.multi_reduction <add>, %100, %cst_39 [0] : vector<2x256xf32> to vector<256xf32>
    %102 = vector.shape_cast %101 : vector<256xf32> to vector<1x256xf32>
    %c0_40 = arith.constant 0 : index
    %c0_41 = arith.constant 0 : index
    %103 = vector.load %arg13[%c0_40, %c0_41] : memref<1x1xf32, #tpu.memory_space<vmem>>, vector<1x1xf32>
    %104 = vector.broadcast %103 : vector<1x1xf32> to vector<1x256xf32>
    %105 = arith.addf %102, %104 : vector<1x256xf32>
    %106 = arith.negf %105 : vector<1x256xf32>
    %107 = math.exp %106 : vector<1x256xf32>
    %cst_42 = arith.constant 1.000000e+00 : f32
    %108 = vector.broadcast %cst_42 : f32 to vector<1x256xf32>
    %109 = arith.addf %108, %107 : vector<1x256xf32>
    %110 = arith.divf %108, %109 : vector<1x256xf32>
    %111 = vector.broadcast %110 : vector<1x256xf32> to vector<16x256xf32>
    %112 = arith.mulf %90, %111 : vector<16x256xf32>
    %113 = arith.addf %112, %1 : vector<16x256xf32>
    %c0_43 = arith.constant 0 : index
    %c0_44 = arith.constant 0 : index
    %c0_45 = arith.constant 0 : index
    %114 = vector.load %arg16[%c0_43, %c0_44, %c0_45] : memref<1x16x256xf32, #tpu.memory_space<vmem>>, vector<1x16x256xf32>
    %115 = vector.shape_cast %114 : vector<1x16x256xf32> to vector<16x256xf32>
    %116 = vector.shape_cast %113 : vector<16x256xf32> to vector<1x16x256xf32>
    tpu.vector_store %arg16[%c0_43, %c0_44, %c0_45], %116 {strides = array<i32>} : memref<1x16x256xf32, #tpu.memory_space<vmem>>, vector<1x16x256xf32>,
    return
  }
  func.func @transform_0(%arg0: i32) -> (i32, i32, i32) {
    %c0_i32 = arith.constant 0 : i32
    %c0_i32_0 = arith.constant 0 : i32
    %c0_i32_1 = arith.constant 0 : i32
    return %arg0, %c0_i32, %c0_i32_0 : i32, i32, i32
  }
  func.func @transform_1(%arg0: i32) -> (i32, i32) {
    %c0_i32 = arith.constant 0 : i32
    %c0_i32_0 = arith.constant 0 : i32
    %c0_i32_1 = arith.constant 0 : i32
    return %c0_i32, %c0_i32_0 : i32, i32
  }
  func.func @transform_2(%arg0: i32) -> (i32, i32) {
    %c0_i32 = arith.constant 0 : i32
    %c0_i32_0 = arith.constant 0 : i32
    %c0_i32_1 = arith.constant 0 : i32
    return %c0_i32, %c0_i32_0 : i32, i32
  }
  func.func @transform_3(%arg0: i32) -> (i32, i32) {
    %c0_i32 = arith.constant 0 : i32
    %c0_i32_0 = arith.constant 0 : i32
    %c0_i32_1 = arith.constant 0 : i32
    return %c0_i32, %c0_i32_0 : i32, i32
  }
  func.func @transform_4(%arg0: i32) -> (i32, i32) {
    %c0_i32 = arith.constant 0 : i32
    %c0_i32_0 = arith.constant 0 : i32
    %c0_i32_1 = arith.constant 0 : i32
    return %c0_i32, %c0_i32_0 : i32, i32
  }
  func.func @transform_5(%arg0: i32) -> (i32, i32) {
    %c0_i32 = arith.constant 0 : i32
    %c0_i32_0 = arith.constant 0 : i32
    %c0_i32_1 = arith.constant 0 : i32
    return %c0_i32, %c0_i32_0 : i32, i32
  }
  func.func @transform_6(%arg0: i32) -> (i32, i32) {
    %c0_i32 = arith.constant 0 : i32
    %c0_i32_0 = arith.constant 0 : i32
    %c0_i32_1 = arith.constant 0 : i32
    return %c0_i32, %c0_i32_0 : i32, i32
  }
  func.func @transform_7(%arg0: i32) -> (i32, i32) {
    %c0_i32 = arith.constant 0 : i32
    %c0_i32_0 = arith.constant 0 : i32
    %c0_i32_1 = arith.constant 0 : i32
    return %c0_i32, %c0_i32_0 : i32, i32
  }
  func.func @transform_8(%arg0: i32) -> (i32, i32) {
    %c0_i32 = arith.constant 0 : i32
    %c0_i32_0 = arith.constant 0 : i32
    %c0_i32_1 = arith.constant 0 : i32
    return %c0_i32, %c0_i32_0 : i32, i32
  }
  func.func @transform_9(%arg0: i32) -> (i32, i32) {
    %c0_i32 = arith.constant 0 : i32
    %c0_i32_0 = arith.constant 0 : i32
    %c0_i32_1 = arith.constant 0 : i32
    return %c0_i32, %c0_i32_0 : i32, i32
  }
  func.func @transform_10(%arg0: i32) -> (i32, i32) {
    %c0_i32 = arith.constant 0 : i32
    %c0_i32_0 = arith.constant 0 : i32
    %c0_i32_1 = arith.constant 0 : i32
    return %c0_i32, %c0_i32_0 : i32, i32
  }
  func.func @transform_11(%arg0: i32) -> (i32, i32) {
    %c0_i32 = arith.constant 0 : i32
    %c0_i32_0 = arith.constant 0 : i32
    %c0_i32_1 = arith.constant 0 : i32
    return %c0_i32, %c0_i32_0 : i32, i32
  }
  func.func @transform_12(%arg0: i32) -> (i32, i32) {
    %c0_i32 = arith.constant 0 : i32
    %c0_i32_0 = arith.constant 0 : i32
    %c0_i32_1 = arith.constant 0 : i32
    return %c0_i32, %c0_i32_0 : i32, i32
  }
  func.func @transform_13(%arg0: i32) -> (i32, i32) {
    %c0_i32 = arith.constant 0 : i32
    %c0_i32_0 = arith.constant 0 : i32
    %c0_i32_1 = arith.constant 0 : i32
    return %c0_i32, %c0_i32_0 : i32, i32
  }
  func.func @transform_14(%arg0: i32) -> (i32, i32) {
    %c0_i32 = arith.constant 0 : i32
    %c0_i32_0 = arith.constant 0 : i32
    %c0_i32_1 = arith.constant 0 : i32
    return %c0_i32, %c0_i32_0 : i32, i32
  }
  func.func @transform_15(%arg0: i32) -> (i32, i32, i32) {
    %c0_i32 = arith.constant 0 : i32
    %c0_i32_0 = arith.constant 0 : i32
    %c0_i32_1 = arith.constant 0 : i32
    return %arg0, %c0_i32, %c0_i32_0 : i32, i32, i32
  }
}

</mosaic_0001>

<bundles_post_ra>
// kernel: tpu_custom_call.1
= control target key start
LH: loop header
LB: loop body
LE: loop exit
PB: predicated region body
PF: predicated region fallthrough
CT: control target
= control target key end

     0   :  { %s3347_s0 = inlined_call_operand.vmem [shape: f32[2,16,256], index: 0, kind: input, shape index: {}]   ;;  %s3348_s1 = inlined_call_operand.vmem [shape: f32[16,144], index: 1, kind: input, shape index: {}]   ;;  %s3349_s2 = inlined_call_operand.vmem [shape: f32[16,1], index: 2, kind: input, shape index: {}]   ;;  %s3350_s3 = inlined_call_operand.hbm [shape: f32[16,144], index: 3, kind: input, shape index: {}]   ;;  %s3351_s4 = inlined_call_operand.vmem [shape: f32[16,1], index: 4, kind: input, shape index: {}]   ;;  %s3352_s5 = inlined_call_operand.vmem [shape: f32[16,2], index: 5, kind: input, shape index: {}]   ;;  %s3353_s6 = inlined_call_operand.vmem [shape: f32[1,2], index: 6, kind: input, shape index: {}]   ;;  %s3354_s7 = inlined_call_operand.vmem [shape: f32[16,2], index: 7, kind: input, shape index: {}]   ;;  %s3355_s8 = inlined_call_operand.vmem [shape: f32[16,1], index: 8, kind: input, shape index: {}]   ;;  %s3356_s9 = inlined_call_operand.vmem [shape: f32[2,16], index: 9, kind: input, shape index: {}]   ;;  %s3357_s10 = inlined_call_operand.vmem [shape: f32[2,1], index: 10, kind: input, shape index: {}]   ;;  %s3358_s11 = inlined_call_operand.vmem [shape: f32[2,1], index: 11, kind: input, shape index: {}]   ;;  %s3359_s12 = inlined_call_operand.<no memory space> [shape: f32[1,1], index: 12, kind: input, shape index: {}]   ;;  %s3360_s13 = inlined_call_operand.vmem [shape: f32[1,256], index: 13, kind: input, shape index: {}]   ;;  %s3361_s14 = inlined_call_operand.vmem [shape: f32[1,256], index: 14, kind: input, shape index: {}]   ;;  %s3362_s15 = inlined_call_operand.hbm [shape: f32[2,16,256], index: 15, kind: output, shape index: {}]  }
   0x1   :  { %v20_v0 = vstv %s3359_s12 }
   0x2   :  { %21 = vst [vmem:[#allocation2] sm:$0x1] %v20_v0 }
   0x3   :  { %22 = vsyncpa [#allocation4], 0 }
   0x4   :  { %23 = vsyncpa [#allocation5], 0 }
   0x5   :  { %25 = vsyncpa [#allocation5 + $0x1], 0  ;;  %s2584_s20 = smov 0   ;;  %s2586_s21 = smov 0  }
   0x6   :  { %s2588_s22 = smov 0   ;;  %s2590_s23 = smov 0  }
   0x7 LB: > { %3380 = sst [smem:[#allocation9_spill]] %s2475_s22  ;;  %s2605_s12 = sadd.s32 4294967295, %s2479_s23   ;;  %s2479_s23 = sphi %s2590_s23, %s3399_s23   ;;  %s2475_s22 = sphi %s2588_s22, %s3401_s22   ;;  %s2471_s21 = sphi %s2586_s21, %s3403_s21   ;;  %s2467_s20 = sphi %s2584_s20, %s3402_s20  }
   0x8   : > { %s1774_s24 = sadd.s32 4294967294, %s2479_s23   ;;  %s2609_s25 = sadd.s32 1, %s2479_s23  }
   0x9   : > { %3381 = sst [smem:[#allocation10_spill]] %s2609_s25  ;;  %s358_s26 = sadd.s32 1, %s2475_s22 }
   0xa   : > { %s355_s27 = ssub.s32 %s2479_s23, %s2609_s25  ;;  %p368_p0 = scmp.ne.s32.totalorder %s2475_s22, %s2471_s21 }
   0xb   : > { %p356_p1 = scmp.eq.s32.totalorder %s355_s27, 0  ;;  %p369_p2 = scmp.eq.s32.totalorder %s2605_s12, 1 }
   0xc   : > { %p374_p3 = scmp.ne.s32.totalorder %s2471_s21, %s2467_s20  ;;  %p375_p4 = scmp.eq.s32.totalorder %s1774_s24, 1 }
   0xd   : > { %s2620_s28 = scalar_select %p356_p1, %s2475_s22, %s358_s26  }
   0xe   : > { %p2622_p5 = por %p369_p2, %p368_p0  ;;  %p2626_p6 = por %p375_p4, %p374_p3 }
   0xf   : > { %3382 = sst [smem:[#allocation11_spill]] %s2620_s28  ;;  %p1775_p7 = scmp.ge.s32.totalorder %s2479_s23, 1 }
  0x10   : > { %s3383_s29 = scalar_select %p2622_p5, 1, 0 }
  0x11   : > { %s3384_s30 = scalar_select %p2626_p6, 1, 0 }
  0x12   : > { %p382_p8 = scmp.lt.s32.totalorder %s2479_s23, 3  ;;  %p3367_p9 = scmp.eq.s32.totalorder %s2605_s12, 0 }
  0x13   : > { %3385 = sst [smem:[#allocation12_spill]] %s3384_s30  ;;  %s2481_s17 = smov [#allocation3]  }
  0x14   : > { %p2633_p10 = pnand %p1775_p7, %p382_p8  ;;  %s400_s18 = sshll.u32 %s2481_s17, 4  ;;  %s401_s18 = int_to_ptr.vmem [resolvable:$true] %s400_s18 }
  0x15   : > { %s2385_s27 = scalar_lea.hbm %s3350_s3, 512 }
  0x16   : > { %s3386_s16 = scalar_select %p2633_p10, 1, 0 }
  0x17   : > { %p1881_p11 = pneg %p2633_p10  ;;  %p2386_p13 = scmp.ne.s32.totalorder %s3350_s3, %s2385_s27 }
  0x18   : > { %p2392_p3 = scmp.lt.u32.totalorder %s2385_s27, %s3350_s3 }
  0x19   : > { %p2641_p12 = pnand %p3367_p9, %p1881_p11 }
  0x1b   : > { %p2387_p0 = pneg %p2641_p12 }
  0x1d   : > { %p2388_p1 = pnand %p2387_p0, %p2386_p13 }
  0x1f   : > { %p2389_p2 = pneg %p2388_p1 }
  0x21   : > { %p2394_p4 = pnand %p2392_p3, %p2389_p2 }
  0x23   : > { %2397 = shalt.err (!%p2394_p4)
}
  0x24   : > { %s2398_s30 = scalar_lea.vmem %s401_s18, 512  ;;  %p2406_p9 = scmp.lt.s32.totalorder %s401_s18, %s401_s18 }
  0x25   : > { %p2399_p7 = scmp.ne.s32.totalorder %s401_s18, %s2398_s30  ;;  %p2407_p6 = scmp.lt.s32.totalorder %s2398_s30, %s2398_s30 }
  0x27   : > { %p2401_p8 = pnand %p2399_p7, %p2387_p0  ;;  %p2408_p5 = por %p2407_p6, %p2406_p9 }
  0x29   : > { %p2402_p11 = pneg %p2401_p8 }
  0x2b   : > { %p2409_p10 = pnand %p2408_p5, %p2402_p11 }
  0x2d   : > { %2412 = shalt.err (!%p2409_p10)
}
  0x2e   : > { %s2482_s22 = smov 256   ;;  %s2483_s28 = smov 16  }
  0x2f   : > { %1884 = dma.hbm_to_vmem [thread:$0]  (!%p2641_p12), %s3350_s3, 512, %s401_s18, [#allocation4], %s2482_s22, %s2482_s22, %s2483_s28  }
  0x30   : > { %p3388_p13 = scmp.ne.s32.totalorder %s3386_s16, 0 }
  0x31   : > { %p3389_p1 = scmp.eq.s32.totalorder (!%p3388_p13), %s2605_s12, 0 }
  0x32   : > { %457 = sbr.rel (%p3388_p13) target bundleno = 2000 (0x7d0), region = 80 }
  0x39   : > { %2458 = dma.done.wait (%p3389_p1), [#allocation4], 512   ;;  %p3390_p0 = pmov %p3389_p1 }
  0x3a   : > { %v517_v1 = vlaneseq  ;;  %v515_v5 = vld [vmem:[%s3361_s14] sm:$0x3]  ;;  %s2484_s19 = smov 113   ;;  %s2485_s27 = smov 127   ;;  %v2490_v17 = vmov 0.0   ;;  %vm552_vm0 = vcmask 924672  }
  0x3b   : > { %2460 = vsyncadd (%p3390_p0), [#allocation4], 4294966784  ;;  %v514_v6 = vld [vmem:[%s3360_s13] sm:$0x3]  ;;  %p505_p5 = scmp.lt.s32.totalorder %s2605_s12, 1  ;;  %s2486_s22 = smov 1  }
  0x3c   : > { %v518_v2 = vshrl.u32 %v517_v1, 7  ;;  %s2487_s24 = smov 15   ;;  %s3376_s18 = smov 17   ;;  %vm566_vm1 = vcmask 1039360   ;;  %vm580_vm2 = vcmask 7168   ;;  %vm594_vm3 = vcmask 121856  }
  0x3d   : > { %s506_s17 = scalar_select %p505_p5, %s2605_s12, 1  ;;  %vm608_vm4 = vcmask 138240   ;;  %vm529_vm5 = vcmask 908288   ;;  %vm737_vm6 = vcmask 777216   ;;  %vm652_vm7 = vcmask 1031168  }
  0x3e   : > { %v2667_v3 = vsub.s32 0, %v518_v2  ;;  %v523_v4 = vsub.s32 1, %v518_v2  ;;  %s2489_s16 = smov 111   ;;  %s3370_s26 = smov 94   ;;  %vm672_vm8 = vcmask 916480   ;;  %vm702_vm9 = vcmask 900096  }
  0x3f   : > { %s1797_s28 = sshll.u32 %s506_s17, 5  ;;  %s2492_s17 = smov 112   ;;  %vm722_vm10 = vcmask 785408   ;;  %vm757_vm11 = vcmask 769024   ;;  %vm961_vm12 = vcmask 130048   ;;  %vm1487_vm13 = vcmask 15360  }
  0x40   : > { %v543_v7 = vrot.slane %v515_v5, %v2667_v3  ;;  %v520_v8 = vrot.slane %v514_v6, %v2667_v3  ;;  %v547_v9 = vrot.slane %v515_v5, %v523_v4  ;;  %v524_v10 = vrot.slane %v514_v6, %v523_v4  ;;  %s2684_s30 = scalar_lea.vmem %s3347_s0, %s1797_s28  ;;  %s3374_s28 = smov 96  }
  0x41   : > { %v2689_v11 = vld [vmem:[%s2684_s30] sm:$0xff]  ;;  %v2692_v12 = vld [vmem:[%s2684_s30 + $0x8] sm:$0xff]  ;;  %v2695_v13 = vld [vmem:[%s2684_s30 + $0x10] sm:$0xff]  ;;  %vm1635_vm14 = vcmask 1041408   ;;  %s502_s25 = sand.u32 1, %s2471_s21   ;;  %p3396_p9 = scmp.ne.s32.totalorder %s3383_s29, 0 }
  0x42   : > { %548 = vrot.lane.b32.xlu0 %v543_v7, %s2484_s19  ;;  %562 = vrot.lane.b32.xlu1 %v520_v8, %s2485_s27  ;;  %v2698_v14 = vld [vmem:[%s2684_s30 + $0x18] sm:$0xff]  ;;  %v2703_v15 = vpack.i.bf16 %v2692_v12, %v2689_v11  ;;  %v2003_v52 = vpack.i.bf16 %v2695_v13, %v2490_v17 }
  0x43   : > { %v1948_v16 = vpack.i.bf16 %v2698_v14, %v2695_v13 }
  0x46   : > { %550 = vrot.lane.b32.xlu0 %v547_v9, %s2484_s19  ;;  %564 = vrot.lane.b32.xlu1 %v524_v10, %s2485_s27  ;;  %s2491_s19 = smov 126  }
  0x4a   : > { %576 = vrot.lane.b32.xlu0 %v543_v7, %s2486_s22  ;;  %578 = vrot.lane.b32.xlu1 %v547_v9, %s2486_s22  ;;  %s3378_s22 = smov 110  }
  0x4e   : > { %590 = vrot.lane.b32.xlu0 %v520_v8, %s2487_s24  ;;  %592 = vrot.lane.b32.xlu1 %v524_v10, %s2487_s24  ;;  %s3372_s24 = smov 95  }
  0x52   : > { %604 = vrot.lane.b32.xlu0 %v543_v7, %s3376_s18  ;;  %606 = vrot.lane.b32.xlu1 %v547_v9, %s3376_s18 }
  0x56   : > { %525 = vrot.lane.b32.xlu0 %v520_v8, %s2489_s16  ;;  %527 = vrot.lane.b32.xlu1 %v524_v10, %s2489_s16 }
  0x5a   : > { %1944 = vrot.lane.b32.xlu0 %v2703_v15, %s2485_s27  ;;  %1949 = vrot.lane.b32.xlu1 %v1948_v16, %s2485_s27 }
  0x5e   : > { %623 = vrot.lane.b32.xlu0 %v2490_v17, %s2485_s27  ;;  %1954 = vrot.lane.b32.xlu1 %v2703_v15, %s2489_s16 }
  0x62   : > { %1959 = vrot.lane.b32.xlu0 %v1948_v16, %s2489_s16 }
  0xb4   : > { %v549_v18 = vpop.permute.xlu0 %548  ;;  %v563_v19 = vpop.permute.xlu1 %562 }
  0xb5   : > { %v557_v20 = vmul.f32 0.0, %v549_v18  ;;  %v571_v21 = vmul.f32 0.0, %v563_v19 }
  0xb7   : > { %642 = vrot.lane.b32.xlu1 %v557_v20, %s2491_s19  ;;  %662 = vrot.lane.b32.xlu0 %v571_v21, %s2492_s17 }
  0xb8   : > { %v2718_v22 = vpop.permute.xlu0 %550  ;;  %v2720_v23 = vpop.permute.xlu1 %564 }
  0xb9   : > { %v2725_v26 = vsel %vm552_vm0, %v549_v18, %v2718_v22  ;;  %v561_v31 = vmul.f32 %v2718_v22, %v2698_v14  ;;  %v2735_v32 = vsel %vm566_vm1, %v563_v19, %v2720_v23  ;;  %v573_v38 = vmul.f32 %v2720_v23, %v2692_v12 }
  0xba   : > { %v560_v30 = vmul.f32 %v2725_v26, %v2695_v13  ;;  %v572_v37 = vmul.f32 %v2735_v32, %v2689_v11  ;;  %v558_v41 = vmul.f32 %v2725_v26, %v2689_v11  ;;  %v559_v42 = vmul.f32 %v2718_v22, %v2692_v12 }
  0xbb   : > { %v574_v44 = vmul.f32 %v2735_v32, %v2695_v13  ;;  %v575_v45 = vmul.f32 %v2720_v23, %v2698_v14 }
  0xbc   : > { %v2722_v24 = vpop.permute.xlu0 %576  ;;  %v579_v25 = vpop.permute.xlu1 %578  ;;  %v1978_v40 = vpack.i.bf16 %v561_v31, %v560_v30  ;;  %v1983_v47 = vpack.i.bf16 %v573_v38, %v572_v37  ;;  %v1973_v48 = vpack.i.bf16 %v559_v42, %v558_v41 }
  0xbd   : > { %v587_v27 = vmul.f32 0.0, %v579_v25  ;;  %v588_v28 = vmul.f32 %v2722_v24, %v2695_v13  ;;  %v2759_v49 = vsel %vm580_vm2, %v2722_v24, %v579_v25  ;;  %v1988_v53 = vpack.i.bf16 %v575_v45, %v574_v44 }
  0xbe   : > { %v585_v57 = vmul.f32 %v2722_v24, %v2689_v11  ;;  %v586_v58 = vmul.f32 %v2759_v49, %v2692_v12  ;;  %v589_v7 = vmul.f32 %v2759_v49, %v2698_v14 }
  0xbf   : > { %v1963_v29 = vpack.i.bf16 %v588_v28, %v587_v27 }
  0xc0   : > { %v2737_v33 = vpop.permute.xlu0 %590  ;;  %v593_v34 = vpop.permute.xlu1 %592  ;;  %v1993_v62 = vpack.i.bf16 %v586_v58, %v585_v57 }
  0xc1   : > { %v601_v35 = vmul.f32 0.0, %v593_v34  ;;  %1964 = vrot.lane.b32.xlu0 %v1963_v29, %s3378_s22  ;;  %v602_v36 = vmul.f32 %v2737_v33, %v2695_v13  ;;  %v2762_v50 = vsel %vm594_vm3, %v2737_v33, %v593_v34  ;;  %v599_v55 = vmul.f32 %v2737_v33, %v2689_v11 }
  0xc2   : > { %v600_v56 = vmul.f32 %v2762_v50, %v2692_v12  ;;  %v603_v6 = vmul.f32 %v2762_v50, %v2698_v14 }
  0xc3   : > { %v1968_v39 = vpack.i.bf16 %v602_v36, %v601_v35 }
  0xc4   : > { %v607_v43 = vpop.permute.xlu1 %606  ;;  %v2756_v46 = vpop.permute.xlu0 %604  ;;  %v2013_v61 = vpack.i.bf16 %v600_v56, %v599_v55 }
  0xc5   : > { %1969 = vrot.lane.b32.xlu1 %v1968_v39, %s3374_s28  ;;  %1979 = vrot.lane.b32.xlu0 %v1978_v40, %s2491_s19  ;;  %v2784_v60 = vsel %vm608_vm4, %v2756_v46, %v607_v43  ;;  %v613_v1 = vmul.f32 %v2756_v46, %v2689_v11  ;;  %v615_v19 = vmul.f32 0.0, %v607_v43  ;;  %v616_v20 = vmul.f32 %v2756_v46, %v2695_v13 }
  0xc6   : > { %v614_v2 = vmul.f32 %v2784_v60, %v2692_v12  ;;  %v617_v21 = vmul.f32 %v2784_v60, %v2698_v14 }
  0xc8   : > { %v2764_v51 = vpop.permute.xlu1 %527  ;;  %v526_v54 = vpop.permute.xlu0 %525  ;;  %v2018_v9 = vpack.i.bf16 %v614_v2, %v613_v1 }
  0xc9   : > { %1984 = vrot.lane.b32.xlu0 %v1983_v47, %s2492_s17  ;;  %1974 = vrot.lane.b32.xlu1 %v1973_v48, %s2491_s19  ;;  %v534_v30 = vmul.f32 0.0, %v526_v54  ;;  %v2834_v42 = vsel %vm529_vm5, %v526_v54, %v2764_v51  ;;  %v536_v45 = vmul.f32 %v2764_v51, %v2692_v12 }
  0xca   : > { %v535_v44 = vmul.f32 %v2834_v42, %v2689_v11 }
  0xcc   : > { %v2778_v59 = vpop.permute.xlu1 %1949  ;;  %v1945_v63 = vpop.permute.xlu0 %1944  ;;  %v2053_v47 = vpack.i.bf16 %v536_v45, %v535_v44 }
  0xcd   : > { %2004 = vrot.lane.b32.xlu0 %v2003_v52, %s3372_s24  ;;  %1989 = vrot.lane.b32.xlu1 %v1988_v53, %s2492_s17  ;;  %v1951_v16 = vunpack.i.l.bf16 %v2778_v59  ;;  %v1952_v18 = vunpack.i.h.bf16 %v2778_v59  ;;  %v1947_v25 = vunpack.i.h.bf16 %v1945_v63  ;;  %v1946_v27 = vunpack.i.l.bf16 %v1945_v63 }
  0xcf   : > { %v636_v28 = vsel %vm566_vm1, %v1951_v16, %v1952_v18  ;;  %v634_v34 = vsel %vm566_vm1, %v1946_v27, %v1947_v25 }
  0xd0   : > { %v1955_v0 = vpop.permute.xlu1 %1954  ;;  %v2801_v10 = vpop.permute.xlu0 %623  ;;  %v2028_v31 = vpack.i.bf16 %v636_v28, %v1947_v25  ;;  %v2023_v36 = vpack.i.bf16 %v634_v34, %v534_v30  ;;  %v538_v34 = vmul.f32 %v2764_v51, %v2698_v14 }
  0xd1   : > { %2014 = vrot.lane.b32.xlu0 %v2013_v61, %s3374_s28  ;;  %1994 = vrot.lane.b32.xlu1 %v1993_v62, %s3378_s22  ;;  %v1957_v4 = vunpack.i.h.bf16 %v1955_v0  ;;  %v1956_v5 = vunpack.i.l.bf16 %v1955_v0  ;;  %v633_v39 = vsel %vm566_vm1, %v2801_v10, %v1946_v27 }
  0xd2   : > { %v2033_v40 = vpack.i.bf16 %v633_v39, %v1952_v18 }
  0xd3   : > { %v2797_v8 = vsel %vm529_vm5, %v1956_v5, %v1957_v4 }
  0xd4   : > { %v2815_v29 = vpop.permute.xlu0 %1959 }
  0xd5   : > { %720 = vrot.lane.b32.xlu0 %v603_v6, %s3374_s28  ;;  %700 = vrot.lane.b32.xlu1 %v589_v7, %s3378_s22  ;;  %v1962_v35 = vunpack.i.h.bf16 %v2815_v29  ;;  %v1961_v38 = vunpack.i.l.bf16 %v2815_v29  ;;  %s3394_s22 = smov 94  }
  0xd7   : > { %v2043_v37 = vpack.i.bf16 %v1956_v5, %v1962_v35  ;;  %v686_v41 = vsel %vm529_vm5, %v1961_v38, %v1962_v35 }
  0xd8   : > { %v2038_v43 = vpack.i.bf16 %v686_v41, %v1957_v4 }
  0xd9   : > { %1999 = vrot.lane.b32.xlu1 %v2703_v15, %s3372_s24  ;;  %2019 = vrot.lane.b32.xlu0 %v2018_v9, %s3370_s26  ;;  %v2008_v15 = vpack.i.bf16 %v616_v20, %v615_v19 }
  0xdd   : > { %735 = vrot.lane.b32.xlu1 %v2698_v14, %s3372_s24  ;;  %755 = vrot.lane.b32.xlu0 %v617_v21, %s3370_s26 }
  0xe1   : > { %2009 = vrot.lane.b32.xlu1 %v2008_v15, %s3370_s26  ;;  %2029 = vrot.lane.b32.xlu0 %v2028_v31, %s3376_s18  ;;  %v537_v31 = vmul.f32 %v2834_v42, %v2695_v13  ;;  %s2498_s26 = smov [#allocation6]  }
  0xe5   : > { %2024 = vrot.lane.b32.xlu1 %v2023_v36, %s3376_s18  ;;  %2044 = vrot.lane.b32.xlu0 %v2043_v37, %s3376_s18 }
  0xe9   : > { %2034 = vrot.lane.b32.xlu1 %v2033_v40, %s3376_s18  ;;  %v2058_v40 = vpack.i.bf16 %v538_v34, %v537_v31 }
  0xed   : > { %2039 = vrot.lane.b32.xlu1 %v2038_v43, %s3376_s18 }
  0xf1   : > { %2054 = vrot.lane.b32.xlu1 %v2053_v47, %s3376_s18 }
 0x129   : > { %v2843_v48 = vpop.permute.xlu1 %642  ;;  %v2845_v52 = vpop.permute.xlu0 %662 }
 0x133   : > { %v2849_v54 = vpop.permute.xlu0 %1964 }
 0x134   : > { %v1967_v29 = vunpack.i.h.bf16 %v2849_v54 }
 0x137   : > { %v2847_v53 = vpop.permute.xlu1 %1969  ;;  %v1980_v56 = vpop.permute.xlu0 %1979 }
 0x138   : > { %v1972_v6 = vunpack.i.h.bf16 %v2847_v53  ;;  %v1982_v7 = vunpack.i.h.bf16 %v1980_v56  ;;  %v1981_v9 = vunpack.i.l.bf16 %v1980_v56 }
 0x13a   : > { %v656_v35 = vsel %vm652_vm7, %v1981_v9, %v1982_v7  ;;  %v655_v41 = vsel %vm652_vm7, %v2843_v48, %v1981_v9 }
 0x13b   : > { %v1975_v55 = vpop.permute.xlu1 %1974  ;;  %v1985_v61 = vpop.permute.xlu0 %1984 }
 0x13c   : > { %v1977_v19 = vunpack.i.h.bf16 %v1975_v55  ;;  %v1987_v25 = vunpack.i.h.bf16 %v1985_v61  ;;  %v1986_v27 = vunpack.i.l.bf16 %v1985_v61  ;;  %v1976_v36 = vunpack.i.l.bf16 %v1975_v55 }
 0x13d   : > { %v635_v61 = vsel %vm566_vm1, %v2801_v10, %v1951_v16 }
 0x13e   : > { %v2073_v37 = vpack.i.bf16 %v656_v35, %v1977_v19  ;;  %v674_v39 = vsel %vm672_vm8, %v1986_v27, %v1987_v25  ;;  %v654_v43 = vsel %vm652_vm7, %v1976_v36, %v1977_v19  ;;  %v673_v9 = vsel %vm672_vm8, %v2845_v52, %v1986_v27 }
 0x13f   : > { %v2851_v57 = vpop.permute.xlu1 %1989  ;;  %v2857_v63 = vpop.permute.xlu0 %2004  ;;  %v2083_v47 = vpack.i.bf16 %v674_v39, %v655_v41  ;;  %v653_v19 = vsel %vm652_vm7, %v2843_v48, %v1976_v36 }
 0x140   : > { %v2007_v1 = vunpack.i.h.bf16 %v2857_v63  ;;  %v2863_v2 = vunpack.i.l.bf16 %v2857_v63  ;;  %v1992_v44 = vunpack.i.h.bf16 %v2851_v57  ;;  %v2078_v16 = vpack.i.bf16 %v653_v19, %v1982_v7  ;;  %v766_v63 = vld [vmem:[%s3349_s2] sm:$0xff] }
 0x143   : > { %v2853_v58 = vpop.permute.xlu1 %1994  ;;  %v2892_v45 = vpop.permute.xlu0 %2014 }
 0x144   : > { %v1997_v55 = vunpack.i.h.bf16 %v2853_v58  ;;  %v1996_v56 = vunpack.i.l.bf16 %v2853_v58  ;;  %v2017_v31 = vunpack.i.h.bf16 %v2892_v45 }
 0x146   : > { %v703_v59 = vsel %vm702_vm9, %v1996_v56, %v1997_v55 }
 0x147   : > { %v2855_v62 = vpop.permute.xlu1 %700  ;;  %v721_v58 = vpop.permute.xlu0 %720 }
 0x148   : > { %v705_v41 = vsel %vm702_vm9, %v1967_v29, %v2855_v62 }
 0x14b   : > { %v2859_v0 = vpop.permute.xlu1 %1999  ;;  %v2020_v35 = vpop.permute.xlu0 %2019 }
 0x14c   : > { %v2002_v4 = vunpack.i.h.bf16 %v2859_v0  ;;  %v2001_v5 = vunpack.i.l.bf16 %v2859_v0  ;;  %v763_v0 = vld [vmem:[%s3348_s1 + $0x8] sm:$0xff] }
 0x14d   : > { %1783 = vmatprep.mubr.msk.f32.mxu0 %vm961_vm12, %v763_v0 }
 0x14e   : > { %v738_v18 = vsel %vm737_vm6, %v2001_v5, %v2002_v4  ;;  %v739_v28 = vsel %vm737_vm6, %v2002_v4, %v2863_v2  ;;  %v2068_v4 = vpack.i.bf16 %v654_v43, %v635_v61 }
 0x14f   : > { %v2871_v20 = vpop.permute.xlu1 %735  ;;  %v2063_v21 = vpack.i.bf16 %v738_v18, %v1972_v6  ;;  %v1991_v18 = vunpack.i.l.bf16 %v2851_v57  ;;  %v2103_v57 = vpack.i.bf16 %v703_v59, %v1961_v38  ;;  %v2927_v38 = vunpack.i.l.bf16 %v2847_v53  ;;  %v756_v53 = vpop.permute.xlu0 %755 }
 0x150   : > { %v740_v15 = vsel %vm737_vm6, %v2007_v1, %v2871_v20 }
 0x151   : > { %v2048_v30 = vpack.i.bf16 %v740_v15, %v739_v28  ;;  %2064 = vrot.lane.b32.xlu1 %v2063_v21, %s3376_s18  ;;  %v2093_v21 = vpack.i.bf16 %v673_v9, %v1992_v44  ;;  %v2911_v28 = vunpack.i.l.bf16 %v2849_v54  ;;  %v676_v15 = vsel %vm672_vm8, %v1991_v18, %v1992_v44 }
 0x152   : > { %v675_v7 = vsel %vm672_vm8, %v2845_v52, %v1991_v18  ;;  %v726_v9 = vsel %vm722_vm10, %v721_v58, %v2927_v38  ;;  %v2021_v18 = vunpack.i.l.bf16 %v2020_v35 }
 0x153   : > { %2049 = vrot.lane.b32.xlu0 %v2048_v30, %s3376_s18  ;;  %v706_v27 = vsel %vm702_vm9, %v2855_v62, %v2911_v28  ;;  %v2088_v30 = vpack.i.bf16 %v676_v15, %v1987_v25  ;;  %v2010_v36 = vpop.permute.xlu1 %2009  ;;  %v2016_v25 = vunpack.i.l.bf16 %v2892_v45  ;;  %v2098_v39 = vpack.i.bf16 %v2797_v8, %v675_v7 }
 0x154   : > { %v2113_v34 = vpack.i.bf16 %v1996_v56, %v706_v27  ;;  %v2012_v43 = vunpack.i.h.bf16 %v2010_v36  ;;  %v2937_v44 = vunpack.i.l.bf16 %v2010_v36  ;;  %v2022_v45 = vunpack.i.h.bf16 %v2020_v35 }
 0x155   : > { %2074 = vrot.lane.b32.xlu1 %v2073_v37, %s3376_s18  ;;  %v725_v37 = vsel %vm722_vm10, %v1972_v6, %v721_v58  ;;  %v704_v6 = vsel %vm702_vm9, %v1997_v55, %v2911_v28  ;;  %v741_v8 = vsel %vm737_vm6, %v2871_v20, %v2863_v2  ;;  %v723_v61 = vsel %vm722_vm10, %v2016_v25, %v2017_v31 }
 0x156   : > { %v760_v62 = vsel %vm757_vm11, %v2012_v43, %v756_v53  ;;  %v759_v56 = vsel %vm757_vm11, %v2022_v45, %v2937_v44  ;;  %v2118_v20 = vpack.i.bf16 %v723_v61, %v1967_v29  ;;  %v2133_v19 = vpack.i.bf16 %v2016_v25, %v726_v9 }
 0x157   : > { %2059 = vrot.lane.b32.xlu0 %v2058_v40, %s3376_s18  ;;  %v724_v40 = vsel %vm722_vm10, %v2017_v31, %v2927_v38  ;;  %v2143_v55 = vpack.i.bf16 %v760_v62, %v759_v56  ;;  %v761_v59 = vsel %vm757_vm11, %v756_v53, %v2937_v44  ;;  %v2497_v15 = vmov 0  }
 0x158   : > { %v2123_v54 = vpack.i.bf16 %v725_v37, %v724_v40  ;;  %v2148_v58 = vpack.i.bf16 %v2021_v18, %v761_v59  ;;  %2153 = vset.pattern.permute.xlu0 %v2497_v15  ;;  %2154 = vset.pattern.permute.xlu1 %v2497_v15 }
 0x159   : > { %2084 = vrot.lane.b32.xlu1 %v2083_v47, %s3376_s18  ;;  %v2108_v47 = vpack.i.bf16 %v705_v41, %v704_v6 }
 0x15b   : > { %2069 = vrot.lane.b32.xlu0 %v2068_v4, %s3376_s18  ;;  %v2128_v4 = vpack.i.bf16 %v2001_v5, %v741_v8 }
 0x15d   : > { %2094 = vrot.lane.b32.xlu1 %v2093_v21, %s3376_s18  ;;  %v758_v21 = vsel %vm757_vm11, %v2021_v18, %v2022_v45 }
 0x15e   : > { %v2138_v5 = vpack.i.bf16 %v758_v21, %v2007_v1  ;;  %v2025_v1 = vpop.permute.xlu1 %2024 }
 0x15f   : > { %2079 = vrot.lane.b32.xlu0 %v2078_v16, %s3376_s18  ;;  %v767_v16 = vld [vmem:[%s3349_s2 + $0x8] sm:$0xff]  ;;  %v2027_v36 = vunpack.i.h.bf16 %v2025_v1  ;;  %v2985_v40 = vunpack.i.l.bf16 %v2025_v1 }
 0x161   : > { %2104 = vrot.lane.b32.xlu1 %v2103_v57, %s3376_s18 }
 0x162   : > { %v2035_v57 = vpop.permute.xlu1 %2034 }
 0x163   : > { %2089 = vrot.lane.b32.xlu0 %v2088_v30, %s3376_s18  ;;  %v2030_v30 = vpop.permute.xlu0 %2029  ;;  %v2036_v29 = vunpack.i.l.bf16 %v2035_v57  ;;  %v2037_v45 = vunpack.i.h.bf16 %v2035_v57 }
 0x164   : > { %v2032_v37 = vunpack.i.h.bf16 %v2030_v30  ;;  %v2031_v25 = vunpack.i.l.bf16 %v2030_v30 }
 0x165   : > { %2114 = vrot.lane.b32.xlu1 %v2113_v34, %s3376_s18 }
 0x166   : > { %v2977_v27 = vpop.permute.xlu1 %2039  ;;  %v896_v62 = vsel %vm608_vm4, %v2032_v37, %v2036_v29 }
 0x167   : > { %2099 = vrot.lane.b32.xlu0 %v2098_v39, %s3376_s18  ;;  %v2979_v7 = vpop.permute.xlu0 %2044 }
 0x169   : > { %2124 = vrot.lane.b32.xlu1 %v2123_v54, %s3376_s18 }
 0x16a   : > { %v2055_v31 = vpop.permute.xlu1 %2054 }
 0x16b   : > { %2109 = vrot.lane.b32.xlu0 %v2108_v47, %s3376_s18  ;;  %v2057_v41 = vunpack.i.h.bf16 %v2055_v31  ;;  %v894_v47 = vsel %vm608_vm4, %v2027_v36, %v2031_v25 }
 0x16c   : > { %v1803_v0 = vpack.c.bf16 %v896_v62, %v894_v47 }
 0x16d   : > { %2129 = vrot.lane.b32.xlu1 %v2128_v4, %s3376_s18 }
 0x16f   : > { %2119 = vrot.lane.b32.xlu0 %v2118_v20, %s3376_s18 }
 0x171   : > { %2144 = vrot.lane.b32.xlu1 %v2143_v55, %s3376_s18 }
 0x173   : > { %2134 = vrot.lane.b32.xlu0 %v2133_v19, %s3376_s18 }
 0x175   : > { %883 = vrot.lane.b32.xlu1 %v2012_v43, %s3376_s18  ;;  %v2056_v43 = vunpack.i.l.bf16 %v2055_v31 }
 0x177   : > { %2139 = vrot.lane.b32.xlu0 %v2138_v5, %s3376_s18  ;;  %v890_v56 = vsel %vm608_vm4, %v2056_v43, %v2057_v41  ;;  %v889_v4 = vsel %vm608_vm4, %v2985_v40, %v2056_v43 }
 0x179   : > { %775 = vperm.xlu1 %2154, %v767_v16  }
 0x17b   : > { %2149 = vrot.lane.b32.xlu0 %v2148_v58, %s3376_s18  ;;  %v893_v58 = vsel %vm608_vm4, %v2037_v45, %v2027_v36  ;;  %s3392_s18 = smov 96  }
 0x17f   : > { %770 = vperm.xlu0 %2153, %v766_v63  }
 0x1c3   : > { %v2981_v34 = vpop.permute.xlu1 %2064 }
 0x1c5   : > { %v2983_v35 = vpop.permute.xlu0 %2049 }
 0x1c7   : > { %v2075_v39 = vpop.permute.xlu1 %2074 }
 0x1c8   : > { %v2077_v1 = vunpack.i.h.bf16 %v2075_v39  ;;  %v2076_v57 = vunpack.i.l.bf16 %v2075_v39  ;;  %v2042_v39 = vunpack.i.h.bf16 %v2977_v27 }
 0x1c9   : > { %v2060_v54 = vpop.permute.xlu0 %2059 }
 0x1ca   : > { %v2062_v53 = vunpack.i.h.bf16 %v2060_v54  ;;  %v2061_v6 = vunpack.i.l.bf16 %v2060_v54 }
 0x1cb   : > { %v2085_v8 = vpop.permute.xlu1 %2084 }
 0x1cc   : > { %v892_v61 = vsel %vm608_vm4, %v2061_v6, %v2062_v53  ;;  %v891_v55 = vsel %vm608_vm4, %v2985_v40, %v2061_v6  ;;  %v2086_v5 = vunpack.i.l.bf16 %v2085_v8  ;;  %v2087_v6 = vunpack.i.h.bf16 %v2085_v8 }
 0x1cd   : > { %v2070_v20 = vpop.permute.xlu0 %2069  ;;  %v1799_v9 = vpack.c.bf16 %v892_v61, %v890_v56  ;;  %v1801_v18 = vpack.c.bf16 %v891_v55, %v889_v4  ;;  %v2046_v56 = vunpack.i.l.bf16 %v2979_v7 }
 0x1ce   : > { %v2071_v19 = vunpack.i.l.bf16 %v2070_v20  ;;  %v2072_v59 = vunpack.i.h.bf16 %v2070_v20  ;;  %v899_v54 = vsel %vm608_vm4, %v2086_v5, %v2077_v1  ;;  %v2047_v5 = vunpack.i.h.bf16 %v2979_v7 }
 0x1cf   : > { %v2095_v21 = vpop.permute.xlu1 %2094  ;;  %1800 = vmatprep.subr.bf16.mxu0 %v1799_v9 }
 0x1d0   : > { %1802 = vmatpush1.bf16.msra.mxu0 %v1801_v18  ;;  %v895_v16 = vsel %vm608_vm4, %v2071_v19, %v2032_v37  ;;  %v898_v25 = vsel %vm608_vm4, %v2072_v59, %v2076_v57  ;;  %v2096_v45 = vunpack.i.l.bf16 %v2095_v21  ;;  %v2097_v4 = vunpack.i.h.bf16 %v2095_v21 }
 0x1d1   : > { %v2080_v15 = vpop.permute.xlu0 %2079  ;;  %1804 = vmatprep.subr.bf16.mxu0 %v1803_v0  ;;  %v1805_v63 = vpack.c.bf16 %v895_v16, %v893_v58  ;;  %v2041_v19 = vunpack.i.l.bf16 %v2977_v27  ;;  %v908_v58 = vsel %vm608_vm4, %v2042_v39, %v2046_v56 }
 0x1d2   : > { %v2082_v30 = vunpack.i.h.bf16 %v2080_v15  ;;  %v2081_v31 = vunpack.i.l.bf16 %v2080_v15  ;;  %v901_v21 = vsel %vm608_vm4, %v2097_v4, %v2087_v6 }
 0x1d3   : > { %v2105_v29 = vpop.permute.xlu1 %2104 }
 0x1d4   : > { %1806 = vmatpush1.bf16.msra.mxu0 %v1805_v63  ;;  %v900_v41 = vsel %vm608_vm4, %v2077_v1, %v2081_v31  ;;  %v897_v43 = vsel %vm608_vm4, %v2082_v30, %v2072_v59  ;;  %v2106_v16 = vunpack.i.l.bf16 %v2105_v29  ;;  %v2107_v1 = vunpack.i.h.bf16 %v2105_v29 }
 0x1d5   : > { %v2090_v36 = vpop.permute.xlu0 %2089  ;;  %v1807_v53 = vpack.c.bf16 %v900_v41, %v898_v25  ;;  %v1809_v37 = vpack.c.bf16 %v899_v54, %v897_v43 }
 0x1d6   : > { %v2092_v47 = vunpack.i.h.bf16 %v2090_v36  ;;  %v2091_v62 = vunpack.i.l.bf16 %v2090_v36  ;;  %v907_v54 = vsel %vm608_vm4, %v2106_v16, %v2042_v39  ;;  %v2066_v39 = vunpack.i.l.bf16 %v2981_v34 }
 0x1d7   : > { %v2115_v61 = vpop.permute.xlu1 %2114  ;;  %1808 = vmatprep.subr.bf16.mxu0 %v1807_v53 }
 0x1d8   : > { %1810 = vmatpush1.bf16.msra.mxu0 %v1809_v37  ;;  %v902_v55 = vsel %vm608_vm4, %v2087_v6, %v2091_v62  ;;  %v904_v20 = vsel %vm608_vm4, %v2092_v47, %v2096_v45  ;;  %v2116_v27 = vunpack.i.l.bf16 %v2115_v61  ;;  %v2117_v43 = vunpack.i.h.bf16 %v2115_v61 }
 0x1d9   : > { %v2100_v9 = vpop.permute.xlu0 %2099  ;;  %v1811_v18 = vpack.c.bf16 %v904_v20, %v902_v55  ;;  %v2052_v20 = vunpack.i.h.bf16 %v2983_v35 }
 0x1da   : > { %v2102_v8 = vunpack.i.h.bf16 %v2100_v9  ;;  %v2101_v0 = vunpack.i.l.bf16 %v2100_v9  ;;  %v909_v55 = vsel %vm608_vm4, %v2117_v43, %v2107_v1 }
 0x1db   : > { %v2125_v59 = vpop.permute.xlu1 %2124  ;;  %1812 = vmatprep.subr.bf16.mxu0 %v1811_v18 }
 0x1dc   : > { %v903_v15 = vsel %vm608_vm4, %v2101_v0, %v2092_v47  ;;  %v906_v63 = vsel %vm608_vm4, %v2102_v8, %v2041_v19  ;;  %v905_v7 = vsel %vm608_vm4, %v2047_v5, %v2102_v8  ;;  %v2127_v62 = vunpack.i.h.bf16 %v2125_v59 }
 0x1dd   : > { %v2110_v57 = vpop.permute.xlu0 %2109  ;;  %v1813_v30 = vpack.c.bf16 %v903_v15, %v901_v21  ;;  %v1815_v31 = vpack.c.bf16 %v908_v58, %v906_v63  ;;  %v1817_v29 = vpack.c.bf16 %v907_v54, %v905_v7  ;;  %v2051_v19 = vunpack.i.l.bf16 %v2983_v35 }
 0x1de   : > { %v2112_v25 = vunpack.i.h.bf16 %v2110_v57  ;;  %v2111_v41 = vunpack.i.l.bf16 %v2110_v57  ;;  %v2126_v8 = vunpack.i.l.bf16 %v2125_v59  ;;  %v2067_v58 = vunpack.i.h.bf16 %v2981_v34 }
 0x1df   : > { %1814 = vmatpush1.bf16.msra.mxu0 %v1813_v30  ;;  %v2130_v37 = vpop.permute.xlu1 %2129  ;;  %v915_v15 = vsel %vm608_vm4, %v2066_v39, %v2127_v62  ;;  %v762_v39 = vld [vmem:[%s3348_s1] sm:$0xff] }
 0x1e0   : > { %1816 = vmatprep.subr.bf16.mxu0 %v1815_v31  ;;  %v910_v36 = vsel %vm608_vm4, %v2107_v1, %v2111_v41  ;;  %v912_v53 = vsel %vm608_vm4, %v2112_v25, %v2116_v27  ;;  %v2131_v56 = vunpack.i.l.bf16 %v2130_v37  ;;  %v2132_v16 = vunpack.i.h.bf16 %v2130_v37 }
 0x1e1   : > { %v2120_v6 = vpop.permute.xlu0 %2119  ;;  %v1819_v45 = vpack.c.bf16 %v912_v53, %v910_v36 }
 0x1e2   : > { %v2121_v47 = vunpack.i.l.bf16 %v2120_v6  ;;  %v2122_v4 = vunpack.i.h.bf16 %v2120_v6  ;;  %v920_v30 = vsel %vm608_vm4, %v2052_v20, %v2131_v56  ;;  %v917_v43 = vsel %vm608_vm4, %v2132_v16, %v2067_v58 }
 0x1e3   : > { %1818 = vmatpush1.bf16.msra.mxu0 %v1817_v29  ;;  %v2145_v21 = vpop.permute.xlu1 %2144 }
 0x1e4   : > { %1820 = vmatprep.subr.bf16.mxu0 %v1819_v45  ;;  %v911_v61 = vsel %vm608_vm4, %v2121_v47, %v2112_v25  ;;  %v914_v63 = vsel %vm608_vm4, %v2122_v4, %v2126_v8  ;;  %v918_v25 = vsel %vm608_vm4, %v2067_v58, %v2051_v19  ;;  %v2147_v41 = vunpack.i.h.bf16 %v2145_v21 }
 0x1e5   : > { %v2135_v9 = vpop.permute.xlu0 %2134  ;;  %v1821_v18 = vpack.c.bf16 %v911_v61, %v909_v55  ;;  %v1827_v34 = vpack.c.bf16 %v920_v30, %v918_v25  ;;  %v2146_v6 = vunpack.i.l.bf16 %v2145_v21 }
 0x1e6   : > { %v2137_v0 = vunpack.i.h.bf16 %v2135_v9  ;;  %v2136_v5 = vunpack.i.l.bf16 %v2135_v9  ;;  %v764_v9 = vld [vmem:[%s3348_s1 + $0x10] sm:$0xff] }
 0x1e7   : > { %1822 = vmatpush1.bf16.msra.mxu0 %v1821_v18  ;;  %v884_v36 = vpop.permute.xlu1 %883 }
 0x1e8   : > { %v916_v1 = vsel %vm608_vm4, %v2127_v62, %v2136_v5  ;;  %v913_v57 = vsel %vm608_vm4, %v2137_v0, %v2122_v4  ;;  %v923_v47 = vsel %vm608_vm4, %v884_v36, %v2147_v41 }
 0x1e9   : > { %v2140_v31 = vpop.permute.xlu0 %2139  ;;  %v1823_v35 = vpack.c.bf16 %v916_v1, %v914_v63  ;;  %v1825_v59 = vpack.c.bf16 %v915_v15, %v913_v57 }
 0x1ea   : > { %v2141_v27 = vunpack.i.l.bf16 %v2140_v31  ;;  %v2142_v7 = vunpack.i.h.bf16 %v2140_v31 }
 0x1eb   : > { %1824 = vmatprep.subr.bf16.mxu0 %v1823_v35 }
 0x1ec   : > { %1826 = vmatpush1.bf16.msra.mxu0 %v1825_v59  ;;  %v919_v54 = vsel %vm608_vm4, %v2141_v27, %v2052_v20  ;;  %v922_v62 = vsel %vm608_vm4, %v2142_v7, %v2146_v6  ;;  %v765_v20 = vld [vmem:[%s3348_s1 + $0x18] sm:$0xff] }
 0x1ed   : > { %v2150_v53 = vpop.permute.xlu0 %2149  ;;  %1828 = vmatprep.subr.bf16.mxu0 %v1827_v34  ;;  %v1829_v37 = vpack.c.bf16 %v919_v54, %v917_v43 }
 0x1ee   : > { %v2152_v29 = vunpack.i.h.bf16 %v2150_v53  ;;  %v2151_v45 = vunpack.i.l.bf16 %v2150_v53 }
 0x1f0   : > { %1830 = vmatpush1.bf16.msra.mxu0 %v1829_v37  ;;  %v924_v56 = vsel %vm608_vm4, %v2147_v41, %v2151_v45  ;;  %v921_v4 = vsel %vm608_vm4, %v2152_v29, %v2142_v7 }
 0x1f1   : > { %v1831_v55 = vpack.c.bf16 %v924_v56, %v922_v62  ;;  %v1833_v61 = vpack.c.bf16 %v923_v47, %v921_v4 }
 0x1f3   : > { %1832 = vmatprep.subr.bf16.mxu0 %v1831_v55 }
 0x1f4   : > { %1834 = vmatpush1.bf16.msra.mxu0 %v1833_v61 }
 0x1f7   : > { %1033 = vmatmul.mubr.f32.vlgmr.msra.gmra.mrb[0].mxu0 %v762_v39 }
 0x1f8   : > { %1784 = vmatprep.mubr.msk.f32.mxu0 %vm961_vm12, %v765_v20  ;;  %v776_v58 = vpop.permute.xlu1 %775 }
 0x1fb   : > { %1039 = vmatmul.mubr.f32.gmra.mrb[2].mxu0 %v764_v9 }
 0x1fc   : > { %1618 = vmatprep.mubr.f32.mxu0 %v2490_v17 }
 0x1fe   : > { %v771_v18 = vpop.permute.xlu0 %770 }
 0x2ca   : > { %v1034_v19 = vpop.f32.mrb[0].mxu0 }
 0x2cb   : > { %v1035_v8 = vadd.f32 %v1034_v19, %v771_v18  ;;  %v1036_v0 = vpop.f32.mrb[1].mxu0 }
 0x2cc   : > { %v1037_v5 = vadd.f32 %v1036_v0, %v771_v18 }
 0x2cd   : > { %v1045_v16 = vmax.f32 %v1035_v8, 0.0 }
 0x2ce   : > { %v1046_v21 = vmax.f32 %v1037_v5, 0.0  ;;  %v1040_v15 = vpop.f32.mrb[2].mxu0 }
 0x2cf   : > { %v1049_v63 = vadd.f32 %v1045_v16, %v2689_v11  ;;  %v1041_v1 = vadd.f32 %v1040_v15, %v776_v58  ;;  %v1042_v57 = vpop.f32.mrb[3].mxu0 }
 0x2d0   : > { %v1050_v30 = vadd.f32 %v1046_v21, %v2692_v12  ;;  %v1043_v31 = vadd.f32 %v1042_v57, %v776_v58 }
 0x2d1   : > { %v1047_v35 = vmax.f32 %v1041_v1, 0.0  ;;  %v1057_v59 = vmul.f32 %v1049_v63, %v2725_v26  ;;  %v1061_v17 = vmul.f32 %v1049_v63, %v2735_v32  ;;  %v1065_v27 = vmul.f32 %v1049_v63, %v2722_v24 }
 0x2d2   : > { %v1048_v25 = vmax.f32 %v1043_v31, 0.0  ;;  %v2155_v34 = vpack.i.bf16 %v1050_v30, %v1049_v63  ;;  %v1058_v41 = vmul.f32 %v1050_v30, %v2718_v22  ;;  %v1062_v7 = vmul.f32 %v1050_v30, %v2720_v23 }
 0x2d3   : > { %v1051_v11 = vadd.f32 %v1047_v35, %v2695_v13  ;;  %v1066_v43 = vmul.f32 %v1050_v30, %v2759_v49  ;;  %v1069_v12 = vmul.f32 %v1049_v63, %v2737_v33  ;;  %v1070_v37 = vmul.f32 %v1050_v30, %v2762_v50 }
 0x2d4   : > { %v1052_v54 = vadd.f32 %v1048_v25, %v2698_v14  ;;  %2156 = vrot.lane.b32.xlu1 %v2155_v34, %s2485_s27  ;;  %v2160_v36 = vpack.i.bf16 %v1058_v41, %v1057_v59  ;;  %v2165_v53 = vpack.i.bf16 %v1062_v7, %v1061_v17  ;;  %v1073_v20 = vmul.f32 %v1049_v63, %v2756_v46 }
 0x2d5   : > { %v1059_v6 = vmul.f32 %v1051_v11, %v2725_v26  ;;  %v1063_v29 = vmul.f32 %v1051_v11, %v2735_v32  ;;  %v2195_v45 = vpack.i.bf16 %v1066_v43, %v1065_v27  ;;  %v1067_v47 = vmul.f32 %v1051_v11, %v2722_v24 }
 0x2d6   : > { %v2175_v13 = vpack.i.bf16 %v1052_v54, %v1051_v11  ;;  %v1060_v62 = vmul.f32 %v1052_v54, %v2718_v22  ;;  %v1064_v56 = vmul.f32 %v1052_v54, %v2720_v23  ;;  %v1068_v14 = vmul.f32 %v1052_v54, %v2759_v49 }
 0x2d7   : > { %v2200_v4 = vpack.i.bf16 %v1070_v37, %v1069_v12  ;;  %v1071_v55 = vmul.f32 %v1051_v11, %v2737_v33  ;;  %v1072_v61 = vmul.f32 %v1052_v54, %v2762_v50  ;;  %v1074_v22 = vmul.f32 %v1050_v30, %v2784_v60 }
 0x2d8   : > { %2176 = vrot.lane.b32.xlu0 %v2175_v13, %s2485_s27  ;;  %2161 = vrot.lane.b32.xlu1 %v2160_v36, %s2491_s19  ;;  %v2180_v26 = vpack.i.bf16 %v1060_v62, %v1059_v6  ;;  %v2185_v32 = vpack.i.bf16 %v1064_v56, %v1063_v29  ;;  %v2210_v39 = vpack.i.bf16 %v1068_v14, %v1067_v47  ;;  %s3391_s27 = smov 110  }
 0x2d9   : > { %v2215_v24 = vpack.i.bf16 %v1072_v61, %v1071_v55  ;;  %v1075_v23 = vmul.f32 %v1051_v11, %v2756_v46  ;;  %v1076_v49 = vmul.f32 %v1052_v54, %v2784_v60  ;;  %v1053_v33 = vmul.f32 %v1049_v63, %v2834_v42 }
 0x2da   : > { %v1054_v50 = vmul.f32 %v1050_v30, %v2764_v51  ;;  %v1055_v9 = vmul.f32 %v1051_v11, %v2834_v42  ;;  %v1056_v18 = vmul.f32 %v1052_v54, %v2764_v51  ;;  %v2225_v19 = vpack.i.bf16 %v1074_v22, %v1073_v20 }
 0x2db   : > { %v2230_v8 = vpack.i.bf16 %v1076_v49, %v1075_v23 }
 0x2dc   : > { %2181 = vrot.lane.b32.xlu0 %v2180_v26, %s2491_s19  ;;  %2166 = vrot.lane.b32.xlu1 %v2165_v53, %s2492_s17  ;;  %v2235_v0 = vpack.i.bf16 %v1054_v50, %v1053_v33  ;;  %v2240_v5 = vpack.i.bf16 %v1056_v18, %v1055_v9  ;;  %s3393_s19 = smov 95  }
 0x2e0   : > { %2186 = vrot.lane.b32.xlu0 %v2185_v32, %s2492_s17  ;;  %2171 = vrot.lane.b32.xlu1 %v2155_v34, %s2489_s16  ;;  %s3395_s17 = smov 17  }
 0x2e4   : > { %2191 = vrot.lane.b32.xlu0 %v2175_v13, %s2489_s16  ;;  %2196 = vrot.lane.b32.xlu1 %v2195_v45, %s3391_s27 }
 0x2e8   : > { %2211 = vrot.lane.b32.xlu0 %v2210_v39, %s3391_s27  ;;  %2201 = vrot.lane.b32.xlu1 %v2200_v4, %s3392_s18  ;;  %s1780_s27 = sshll.u32 %s502_s25, 5 }
 0x2ec   : > { %2216 = vrot.lane.b32.xlu0 %v2215_v24, %s3392_s18  ;;  %2206 = vrot.lane.b32.xlu1 %v2155_v34, %s3393_s19  ;;  %s1798_s18 = sshll.u32 %s2605_s12, 9  ;;  %s3306_s12 = scalar_lea.sflag [#allocation5], %s502_s25 }
 0x2ed   : > { %s3300_s28 = scalar_lea.hbm %s3362_s15, %s1798_s18 }
 0x2f0   : > { %2221 = vrot.lane.b32.xlu0 %v2175_v13, %s3393_s19  ;;  %2226 = vrot.lane.b32.xlu1 %v2225_v19, %s3394_s22  ;;  %s504_s19 = scalar_lea.vmem [#allocation6], %s1780_s27  ;;  %s2417_s27 = sshll.u32 %s2498_s26, 4  ;;  %s2418_s27 = int_to_ptr.vmem [resolvable:$false] %s2417_s27 }
 0x2f1   : > { %s2419_s18 = scalar_lea.vmem %s2418_s27, 1024 }
 0x2f4   : > { %2231 = vrot.lane.b32.xlu0 %v2230_v8, %s3394_s22  ;;  %2236 = vrot.lane.b32.xlu1 %v2235_v0, %s3395_s17  ;;  %s1700_s22 = sshll.u32 %s504_s19, 4  ;;  %s3302_s22 = int_to_ptr.vmem [resolvable:$true] %s1700_s22 }
 0x2f5   : > { %s2413_s24 = scalar_lea.vmem %s3302_s22, 512  ;;  %p2420_p2 = scmp.lt.s32.totalorder %s3302_s22, %s2418_s27 }
 0x2f6   : > { %p2414_p6 = scmp.ne.s32.totalorder %s3302_s22, %s2413_s24  ;;  %p2421_p3 = scmp.lt.s32.totalorder %s2419_s18, %s2413_s24 }
 0x2f8   : > { %2241 = vrot.lane.b32.xlu0 %v2240_v5, %s3395_s17  ;;  %p2415_p10 = pnand %p2414_p6, %p3396_p9  ;;  %p2422_p4 = por %p2421_p3, %p2420_p2 }
 0x2fa   : > { %p2416_p12 = pneg %p2415_p10 }
 0x2fc   : > { %p2423_p7 = pnand %p2422_p4, %p2416_p12 }
 0x346   : > { %v2157_v46 = vpop.permute.xlu1 %2156 }
 0x347   : > { %v2159_v51 = vunpack.i.h.bf16 %v2157_v46  ;;  %v2158_v60 = vunpack.i.l.bf16 %v2157_v46 }
 0x349   : > { %v1090_v42 = vsel %vm566_vm1, %v2158_v60, %v2159_v51  ;;  %v1089_v43 = vsel %vm566_vm1, %v2801_v10, %v2158_v60 }
 0x34a   : > { %v2245_v58 = vpack.i.bf16 %v2159_v51, %v1090_v42  ;;  %v2177_v16 = vpop.permute.xlu0 %2176  ;;  %v3091_v21 = vpop.permute.xlu1 %2161 }
 0x34b   : > { %v2178_v1 = vunpack.i.l.bf16 %v2177_v16  ;;  %v2164_v35 = vunpack.i.h.bf16 %v3091_v21  ;;  %v2163_v25 = vunpack.i.l.bf16 %v3091_v21  ;;  %v2179_v14 = vunpack.i.h.bf16 %v2177_v16 }
 0x34c   : > { %2246 = vrot.lane.b32.xlu1 %v2245_v58, %s3395_s17 }
 0x34d   : > { %v1091_v7 = vsel %vm566_vm1, %v2801_v10, %v2178_v1  ;;  %v1106_v37 = vsel %vm652_vm7, %v2163_v25, %v2164_v35  ;;  %v1092_v22 = vsel %vm566_vm1, %v2178_v1, %v2179_v14  ;;  %v1105_v60 = vsel %vm652_vm7, %v2843_v48, %v2163_v25 }
 0x34e   : > { %v2182_v15 = vpop.permute.xlu0 %2181  ;;  %v2167_v63 = vpop.permute.xlu1 %2166  ;;  %v2270_v53 = vpack.i.bf16 %v1091_v7, %v1089_v43  ;;  %v2255_v13 = vpack.i.bf16 %v2164_v35, %v1106_v37  ;;  %v2275_v9 = vpack.i.bf16 %v2179_v14, %v1092_v22 }
 0x34f   : > { %v2169_v57 = vunpack.i.h.bf16 %v2167_v63  ;;  %v2168_v30 = vunpack.i.l.bf16 %v2167_v63  ;;  %v2184_v4 = vunpack.i.h.bf16 %v2182_v15  ;;  %v2183_v55 = vunpack.i.l.bf16 %v2182_v15 }
 0x351   : > { %v1122_v31 = vsel %vm672_vm8, %v2168_v30, %v2169_v57  ;;  %v1121_v26 = vsel %vm672_vm8, %v2845_v52, %v2168_v30  ;;  %v1108_v23 = vsel %vm652_vm7, %v2183_v55, %v2184_v4  ;;  %v1107_v8 = vsel %vm652_vm7, %v2843_v48, %v2183_v55 }
 0x352   : > { %v2260_v59 = vpack.i.bf16 %v2169_v57, %v1122_v31  ;;  %v3096_v17 = vpop.permute.xlu0 %2186  ;;  %v2172_v27 = vpop.permute.xlu1 %2171  ;;  %v2285_v15 = vpack.i.bf16 %v1107_v8, %v1105_v60 }
 0x353   : > { %v2174_v34 = vunpack.i.h.bf16 %v2172_v27  ;;  %v2173_v41 = vunpack.i.l.bf16 %v2172_v27  ;;  %v2188_v6 = vunpack.i.l.bf16 %v3096_v17  ;;  %v2189_v50 = vunpack.i.h.bf16 %v3096_v17 }
 0x354   : > { %2261 = vrot.lane.b32.xlu1 %v2260_v59, %s3395_s17 }
 0x355   : > { %v1133_v11 = vsel %vm529_vm5, %v2173_v41, %v2174_v34  ;;  %v1123_v61 = vsel %vm672_vm8, %v2845_v52, %v2188_v6  ;;  %v2295_v52 = vpack.i.bf16 %v2184_v4, %v1108_v23  ;;  %v1124_v46 = vsel %vm672_vm8, %v2188_v6, %v2189_v50 }
 0x356   : > { %v2250_v12 = vpack.i.bf16 %v2174_v34, %v1133_v11  ;;  %v2192_v54 = vpop.permute.xlu0 %2191  ;;  %v2197_v36 = vpop.permute.xlu1 %2196  ;;  %v2290_v20 = vpack.i.bf16 %v1123_v61, %v1121_v26  ;;  %v2310_v30 = vpack.i.bf16 %v2189_v50, %v1124_v46 }
 0x357   : > { %v2194_v29 = vunpack.i.h.bf16 %v2192_v54  ;;  %v2193_v45 = vunpack.i.l.bf16 %v2192_v54  ;;  %v2199_v49 = vunpack.i.h.bf16 %v2197_v36  ;;  %v2198_v33 = vunpack.i.l.bf16 %v2197_v36 }
 0x358   : > { %2251 = vrot.lane.b32.xlu0 %v2250_v12, %s3395_s17  ;;  %2271 = vrot.lane.b32.xlu1 %v2270_v53, %s3395_s17 }
 0x359   : > { %v1134_v47 = vsel %vm529_vm5, %v2193_v45, %v2194_v29  ;;  %v2265_v32 = vpack.i.bf16 %v2193_v45, %v2173_v41  ;;  %v1147_v0 = vsel %vm702_vm9, %v2198_v33, %v2199_v49  ;;  %v1148_v5 = vsel %vm702_vm9, %v2199_v49, %v2911_v28 }
 0x35a   : > { %v2280_v62 = vpack.i.bf16 %v2194_v29, %v1134_v47  ;;  %v3110_v56 = vpop.permute.xlu0 %2211  ;;  %v3112_v10 = vpop.permute.xlu1 %2201  ;;  %v2300_v63 = vpack.i.bf16 %v1148_v5, %v1147_v0 }
 0x35b   : > { %v2213_v51 = vunpack.i.l.bf16 %v3110_v56  ;;  %v2204_v42 = vunpack.i.h.bf16 %v3112_v10  ;;  %v2203_v58 = vunpack.i.l.bf16 %v3112_v10  ;;  %v2214_v48 = vunpack.i.h.bf16 %v3110_v56 }
 0x35c   : > { %2256 = vrot.lane.b32.xlu0 %v2255_v13, %s3395_s17  ;;  %2281 = vrot.lane.b32.xlu1 %v2280_v62, %s3395_s17 }
 0x35d   : > { %v2305_v31 = vpack.i.bf16 %v2213_v51, %v2198_v33  ;;  %v1163_v34 = vsel %vm722_vm10, %v2203_v58, %v2204_v42  ;;  %v1164_v41 = vsel %vm722_vm10, %v2204_v42, %v2927_v38  ;;  %v1149_v56 = vsel %vm702_vm9, %v2213_v51, %v2214_v48 }
 0x35e   : > { %v3120_v39 = vpop.permute.xlu0 %2216  ;;  %v3122_v24 = vpop.permute.xlu1 %2206  ;;  %v2315_v29 = vpack.i.bf16 %v1164_v41, %v1163_v34  ;;  %v1150_v10 = vsel %vm702_vm9, %v2214_v48, %v2911_v28 }
 0x35f   : > { %v2209_v1 = vunpack.i.h.bf16 %v3122_v24  ;;  %v2208_v57 = vunpack.i.l.bf16 %v3122_v24  ;;  %v2219_v17 = vunpack.i.h.bf16 %v3120_v39  ;;  %v2218_v27 = vunpack.i.l.bf16 %v3120_v39 }
 0x360   : > { %2266 = vrot.lane.b32.xlu0 %v2265_v32, %s3395_s17  ;;  %2291 = vrot.lane.b32.xlu1 %v2290_v20, %s3395_s17  ;;  %v2320_v4 = vpack.i.bf16 %v1150_v10, %v1149_v56 }
 0x361   : > { %v1176_v7 = vsel %vm737_vm6, %v2209_v1, %v2863_v2  ;;  %v1175_v11 = vsel %vm737_vm6, %v2208_v57, %v2209_v1  ;;  %v1166_v13 = vsel %vm722_vm10, %v2219_v17, %v2927_v38  ;;  %v1165_v62 = vsel %vm722_vm10, %v2218_v27, %v2219_v17 }
 0x362   : > { %v3129_v18 = vpop.permute.xlu0 %2221  ;;  %v3131_v19 = vpop.permute.xlu1 %2226  ;;  %v2330_v6 = vpack.i.bf16 %v1176_v7, %v1175_v11  ;;  %v2325_v28 = vpack.i.bf16 %v2218_v27, %v2203_v58 }
 0x363   : > { %v2223_v14 = vunpack.i.l.bf16 %v3129_v18  ;;  %v2224_v55 = vunpack.i.h.bf16 %v3129_v18  ;;  %v2229_v32 = vunpack.i.h.bf16 %v3131_v19  ;;  %v2228_v39 = vunpack.i.l.bf16 %v3131_v19 }
 0x364   : > { %2276 = vrot.lane.b32.xlu0 %v2275_v9, %s3395_s17  ;;  %2296 = vrot.lane.b32.xlu1 %v2295_v52, %s3395_s17  ;;  %v1199_v52 = vld [vmem:[%s3351_s4] sm:$0xff] }
 0x365   : > { %v2345_v26 = vpack.i.bf16 %v2223_v14, %v2208_v57  ;;  %v1178_v24 = vsel %vm737_vm6, %v2224_v55, %v2863_v2  ;;  %v1177_v20 = vsel %vm737_vm6, %v2223_v14, %v2224_v55  ;;  %v1192_v50 = vsel %vm757_vm11, %v2229_v32, %v2937_v44  ;;  %v1196_v2 = vld [vmem:[#allocation3 + $0x8] sm:$0xff] }
 0x366   : > { %v3146_v16 = vpop.permute.xlu0 %2231  ;;  %v2237_v21 = vpop.permute.xlu1 %2236  ;;  %v2335_v49 = vpack.i.bf16 %v1178_v24, %v1177_v20  ;;  %v1191_v9 = vsel %vm757_vm11, %v2228_v39, %v2229_v32  ;;  %1785 = vmatprep.mubr.msk.f32.mxu1 %vm961_vm12, %v1196_v2 }
 0x367   : > { %v2239_v35 = vunpack.i.h.bf16 %v2237_v21  ;;  %v2238_v59 = vunpack.i.l.bf16 %v2237_v21  ;;  %v2234_v38 = vunpack.i.h.bf16 %v3146_v16  ;;  %v2233_v61 = vunpack.i.l.bf16 %v3146_v16 }
 0x368   : > { %2286 = vrot.lane.b32.xlu0 %v2285_v15, %s3395_s17  ;;  %2301 = vrot.lane.b32.xlu1 %v2300_v63, %s3395_s17  ;;  %v2350_v18 = vpack.i.bf16 %v1192_v50, %v1191_v9 }
 0x369   : > { %v1320_v54 = vsel %vm608_vm4, %v2238_v59, %v2239_v35  ;;  %v1319_v53 = vsel %vm608_vm4, %v2985_v40, %v2238_v59  ;;  %v1194_v22 = vsel %vm757_vm11, %v2234_v38, %v2937_v44  ;;  %v1193_v23 = vsel %vm757_vm11, %v2233_v61, %v2234_v38  ;;  %v1200_v44 = vld [vmem:[%s3351_s4 + $0x8] sm:$0xff] }
 0x36a   : > { %v2242_v25 = vpop.permute.xlu0 %2241  ;;  %v2355_v33 = vpack.i.bf16 %v1194_v22, %v1193_v23  ;;  %v2360_v19 = vpack.i.bf16 %v2233_v61, %v2228_v39 }
 0x36b   : > { %v2244_v43 = vunpack.i.h.bf16 %v2242_v25  ;;  %v2243_v12 = vunpack.i.l.bf16 %v2242_v25 }
 0x36c   : > { %2311 = vrot.lane.b32.xlu0 %v2310_v30, %s3395_s17  ;;  %2306 = vrot.lane.b32.xlu1 %v2305_v31, %s3395_s17 }
 0x36d   : > { %v1322_v36 = vsel %vm608_vm4, %v2243_v12, %v2244_v43  ;;  %v1321_v37 = vsel %vm608_vm4, %v2985_v40, %v2243_v12  ;;  %v2340_v40 = vpack.i.bf16 %v1166_v13, %v1165_v62 }
 0x36e   : > { %v1835_v45 = vpack.c.bf16 %v1322_v36, %v1320_v54  ;;  %v1837_v47 = vpack.c.bf16 %v1321_v37, %v1319_v53 }
 0x370   : > { %2316 = vrot.lane.b32.xlu0 %v2315_v29, %s3395_s17  ;;  %2331 = vrot.lane.b32.xlu1 %v2330_v6, %s3395_s17 }
 0x371   : > { %1836 = vmatprep.subr.bf16.mxu1 %v1835_v45 }
 0x372   : > { %1838 = vmatpush1.bf16.msra.mxu1 %v1837_v47 }
 0x374   : > { %2321 = vrot.lane.b32.xlu0 %v2320_v4, %s3395_s17  ;;  %2341 = vrot.lane.b32.xlu1 %v2340_v40, %s3395_s17 }
 0x378   : > { %2326 = vrot.lane.b32.xlu0 %v2325_v28, %s3395_s17  ;;  %2346 = vrot.lane.b32.xlu1 %v2345_v26, %s3395_s17 }
 0x37c   : > { %2336 = vrot.lane.b32.xlu0 %v2335_v49, %s3395_s17  ;;  %2356 = vrot.lane.b32.xlu1 %v2355_v33, %s3395_s17 }
 0x380   : > { %2351 = vrot.lane.b32.xlu0 %v2350_v18, %s3395_s17  ;;  %1203 = vperm.xlu1 %2154, %v1199_v52  }
 0x384   : > { %2361 = vrot.lane.b32.xlu0 %v2360_v19, %s3395_s17 }
 0x388   : > { %1208 = vperm.xlu0 %2153, %v1200_v44  }
 0x3be   : > { %v2247_v8 = vpop.permute.xlu1 %2246 }
 0x3bf   : > { %v2249_v16 = vunpack.i.h.bf16 %v2247_v8  ;;  %v2248_v21 = vunpack.i.l.bf16 %v2247_v8 }
 0x3c1   : > { %v1324_v27 = vsel %vm608_vm4, %v2248_v21, %v2249_v16 }
 0x3c6   : > { %v2262_v0 = vpop.permute.xlu1 %2261 }
 0x3c7   : > { %v2264_v6 = vunpack.i.h.bf16 %v2262_v0  ;;  %v2263_v29 = vunpack.i.l.bf16 %v2262_v0 }
 0x3c9   : > { %v1332_v24 = vsel %vm608_vm4, %v2263_v29, %v2264_v6 }
 0x3ca   : > { %v3207_v5 = vpop.permute.xlu0 %2251  ;;  %v2272_v46 = vpop.permute.xlu1 %2271 }
 0x3cb   : > { %v2273_v15 = vunpack.i.l.bf16 %v2272_v46  ;;  %v2274_v63 = vunpack.i.h.bf16 %v2272_v46  ;;  %v2254_v40 = vunpack.i.h.bf16 %v3207_v5  ;;  %v2253_v14 = vunpack.i.l.bf16 %v3207_v5 }
 0x3cd   : > { %v1323_v34 = vsel %vm608_vm4, %v2273_v15, %v2248_v21  ;;  %v1336_v52 = vsel %vm608_vm4, %v2253_v14, %v2254_v40 }
 0x3ce   : > { %v2257_v51 = vpop.permute.xlu0 %2256  ;;  %v2282_v60 = vpop.permute.xlu1 %2281 }
 0x3cf   : > { %v2259_v1 = vunpack.i.h.bf16 %v2257_v51  ;;  %v2258_v57 = vunpack.i.l.bf16 %v2257_v51  ;;  %v2284_v45 = vunpack.i.h.bf16 %v2282_v60  ;;  %v2283_v13 = vunpack.i.l.bf16 %v2282_v60 }
 0x3d1   : > { %v1328_v37 = vsel %vm608_vm4, %v2258_v57, %v2259_v1  ;;  %v1338_v49 = vsel %vm608_vm4, %v2283_v13, %v2284_v45 }
 0x3d2   : > { %v2267_v42 = vpop.permute.xlu0 %2266  ;;  %v2292_v58 = vpop.permute.xlu1 %2291  ;;  %v1851_v0 = vpack.c.bf16 %v1338_v49, %v1336_v52  ;;  %v1197_v52 = vld [vmem:[#allocation3 + $0x10] sm:$0xff] }
 0x3d3   : > { %v2293_v62 = vunpack.i.l.bf16 %v2292_v58  ;;  %v2269_v4 = vunpack.i.h.bf16 %v2267_v42  ;;  %v2268_v28 = vunpack.i.l.bf16 %v2267_v42  ;;  %v2294_v26 = vunpack.i.h.bf16 %v2292_v58 }
 0x3d5   : > { %v1331_v22 = vsel %vm608_vm4, %v2293_v62, %v2263_v29  ;;  %v1335_v18 = vsel %vm608_vm4, %v2268_v28, %v2253_v14  ;;  %v1337_v19 = vsel %vm608_vm4, %v2269_v4, %v2283_v13 }
 0x3d6   : > { %v2277_v30 = vpop.permute.xlu0 %2276  ;;  %v2297_v48 = vpop.permute.xlu1 %2296  ;;  %v1853_v16 = vpack.c.bf16 %v1337_v19, %v1335_v18 }
 0x3d7   : > { %v2279_v31 = vunpack.i.h.bf16 %v2277_v30  ;;  %v2278_v35 = vunpack.i.l.bf16 %v2277_v30  ;;  %v2299_v59 = vunpack.i.h.bf16 %v2297_v48  ;;  %v2298_v17 = vunpack.i.l.bf16 %v2297_v48 }
 0x3d9   : > { %v1326_v25 = vsel %vm608_vm4, %v2278_v35, %v2279_v31  ;;  %v1325_v41 = vsel %vm608_vm4, %v2274_v63, %v2278_v35  ;;  %v1330_v7 = vsel %vm608_vm4, %v2298_v17, %v2299_v59 }
 0x3da   : > { %v2287_v11 = vpop.permute.xlu0 %2286  ;;  %v2302_v43 = vpop.permute.xlu1 %2301  ;;  %v1839_v12 = vpack.c.bf16 %v1326_v25, %v1324_v27  ;;  %v1841_v54 = vpack.c.bf16 %v1325_v41, %v1323_v34  ;;  %v1843_v47 = vpack.c.bf16 %v1330_v7, %v1328_v37 }
 0x3db   : > { %v2289_v36 = vunpack.i.h.bf16 %v2287_v11  ;;  %v2288_v53 = vunpack.i.l.bf16 %v2287_v11  ;;  %v2304_v44 = vunpack.i.h.bf16 %v2302_v43  ;;  %v2303_v8 = vunpack.i.l.bf16 %v2302_v43 }
 0x3dc   : > { %1840 = vmatprep.subr.bf16.mxu1 %v1839_v12 }
 0x3dd   : > { %1842 = vmatpush1.bf16.msra.mxu1 %v1841_v54  ;;  %v1327_v56 = vsel %vm608_vm4, %v2288_v53, %v2258_v57  ;;  %v1329_v10 = vsel %vm608_vm4, %v2289_v36, %v2298_v17  ;;  %v1340_v57 = vsel %vm608_vm4, %v2303_v8, %v2304_v44 }
 0x3de   : > { %v2312_v55 = vpop.permute.xlu0 %2311  ;;  %v2307_v38 = vpop.permute.xlu1 %2306  ;;  %1844 = vmatprep.subr.bf16.mxu1 %v1843_v47  ;;  %v1845_v61 = vpack.c.bf16 %v1329_v10, %v1327_v56 }
 0x3df   : > { %v2314_v32 = vunpack.i.h.bf16 %v2312_v55  ;;  %v2313_v39 = vunpack.i.l.bf16 %v2312_v55  ;;  %v2308_v5 = vunpack.i.l.bf16 %v2307_v38  ;;  %v2309_v46 = vunpack.i.h.bf16 %v2307_v38 }
 0x3e1   : > { %1846 = vmatpush1.bf16.msra.mxu1 %v1845_v61  ;;  %v1334_v20 = vsel %vm608_vm4, %v2313_v39, %v2314_v32  ;;  %v1333_v23 = vsel %vm608_vm4, %v2294_v26, %v2313_v39  ;;  %v1339_v48 = vsel %vm608_vm4, %v2308_v5, %v2303_v8 }
 0x3e2   : > { %v2317_v33 = vpop.permute.xlu0 %2316  ;;  %v2332_v50 = vpop.permute.xlu1 %2331  ;;  %v1847_v9 = vpack.c.bf16 %v1334_v20, %v1332_v24  ;;  %v1849_v2 = vpack.c.bf16 %v1333_v23, %v1331_v22 }
 0x3e3   : > { %v2319_v51 = vunpack.i.h.bf16 %v2317_v33  ;;  %v2318_v60 = vunpack.i.l.bf16 %v2317_v33  ;;  %v2334_v11 = vunpack.i.h.bf16 %v2332_v50  ;;  %v2333_v43 = vunpack.i.l.bf16 %v2332_v50 }
 0x3e4   : > { %1848 = vmatprep.subr.bf16.mxu1 %v1847_v9  ;;  %v1195_v9 = vld [vmem:[#allocation3] sm:$0xff] }
 0x3e5   : > { %1850 = vmatpush1.bf16.msra.mxu1 %v1849_v2  ;;  %v1344_v7 = vsel %vm608_vm4, %v2318_v60, %v2319_v51  ;;  %v1348_v62 = vsel %vm608_vm4, %v2333_v43, %v2334_v11  ;;  %v1198_v2 = vld [vmem:[#allocation3 + $0x18] sm:$0xff] }
 0x3e6   : > { %v2322_v42 = vpop.permute.xlu0 %2321  ;;  %v2342_v58 = vpop.permute.xlu1 %2341  ;;  %1852 = vmatprep.subr.bf16.mxu1 %v1851_v0  ;;  %v1497_v11 = vld [vmem:[%s3353_s6] sm:$0x1] }
 0x3e7   : > { %v2324_v21 = vunpack.i.h.bf16 %v2322_v42  ;;  %v2323_v15 = vunpack.i.l.bf16 %v2322_v42  ;;  %v2344_v63 = vunpack.i.h.bf16 %v2342_v58  ;;  %v2343_v1 = vunpack.i.l.bf16 %v2342_v58 }
 0x3e9   : > { %1854 = vmatpush1.bf16.msra.mxu1 %v1853_v16  ;;  %v1342_v30 = vsel %vm608_vm4, %v2323_v15, %v2324_v21  ;;  %v1341_v31 = vsel %vm608_vm4, %v2309_v46, %v2323_v15  ;;  %v1346_v35 = vsel %vm608_vm4, %v2343_v1, %v2344_v63  ;;  %v1483_v63 = vld [vmem:[%s3352_s5] sm:$0xff] }
 0x3ea   : > { %v2327_v59 = vpop.permute.xlu0 %2326  ;;  %v2347_v17 = vpop.permute.xlu1 %2346  ;;  %v1855_v27 = vpack.c.bf16 %v1342_v30, %v1340_v57  ;;  %v1857_v25 = vpack.c.bf16 %v1341_v31, %v1339_v48  ;;  %v1859_v54 = vpack.c.bf16 %v1346_v35, %v1344_v7 }
 0x3eb   : > { %v2329_v34 = vunpack.i.h.bf16 %v2327_v59  ;;  %v2328_v41 = vunpack.i.l.bf16 %v2327_v59  ;;  %v2348_v12 = vunpack.i.l.bf16 %v2347_v17  ;;  %v2349_v45 = vunpack.i.h.bf16 %v2347_v17 }
 0x3ec   : > { %1856 = vmatprep.subr.bf16.mxu1 %v1855_v27 }
 0x3ed   : > { %1858 = vmatpush1.bf16.msra.mxu1 %v1857_v25  ;;  %v1343_v36 = vsel %vm608_vm4, %v2328_v41, %v2318_v60  ;;  %v1345_v53 = vsel %vm608_vm4, %v2329_v34, %v2343_v1  ;;  %v1347_v56 = vsel %vm608_vm4, %v2348_v12, %v2333_v43  ;;  %v1484_v1 = vld [vmem:[%s3352_s5 + $0x8] sm:$0xff] }
 0x3ee   : > { %v2337_v37 = vpop.permute.xlu0 %2336  ;;  %v2357_v6 = vpop.permute.xlu1 %2356  ;;  %1860 = vmatprep.subr.bf16.mxu1 %v1859_v54  ;;  %v1861_v29 = vpack.c.bf16 %v1345_v53, %v1343_v36  ;;  %v1501_v36 = vld [vmem:[%s3354_s7 + $0x8] sm:$0xff]  ;;  %v1500_v53 = vld [vmem:[%s3354_s7] sm:$0xff] }
 0x3ef   : > { %v2339_v47 = vunpack.i.h.bf16 %v2337_v37  ;;  %v2338_v13 = vunpack.i.l.bf16 %v2337_v37  ;;  %v2359_v10 = vunpack.i.h.bf16 %v2357_v6  ;;  %v2358_v40 = vunpack.i.l.bf16 %v2357_v6 }
 0x3f1   : > { %1862 = vmatpush1.bf16.msra.mxu1 %v1861_v29  ;;  %v1350_v14 = vsel %vm608_vm4, %v2338_v13, %v2339_v47  ;;  %v1349_v4 = vsel %vm608_vm4, %v2349_v45, %v2338_v13  ;;  %v1354_v39 = vsel %vm608_vm4, %v2358_v40, %v2359_v10  ;;  %v1515_v13 = vld [vmem:[%s3355_s8 + $0x8] sm:$0xff] }
 0x3f2   : > { %v2352_v55 = vpop.permute.xlu0 %2351  ;;  %v1863_v38 = vpack.c.bf16 %v1350_v14, %v1348_v62  ;;  %v1865_v61 = vpack.c.bf16 %v1349_v4, %v1347_v56  ;;  %v1514_v62 = vld [vmem:[%s3355_s8] sm:$0xff] }
 0x3f3   : > { %v2354_v28 = vunpack.i.h.bf16 %v2352_v55  ;;  %v2353_v26 = vunpack.i.l.bf16 %v2352_v55 }
 0x3f4   : > { %1864 = vmatprep.subr.bf16.mxu1 %v1863_v38 }
 0x3f5   : > { %1866 = vmatpush1.bf16.msra.mxu1 %v1865_v61  ;;  %v1352_v32 = vsel %vm608_vm4, %v2353_v26, %v2354_v28 }
 0x3f6   : > { %v2362_v24 = vpop.permute.xlu0 %2361  ;;  %v1867_v20 = vpack.c.bf16 %v1354_v39, %v1352_v32 }
 0x3f7   : > { %v2364_v22 = vunpack.i.h.bf16 %v2362_v24  ;;  %v2363_v23 = vunpack.i.l.bf16 %v2362_v24  ;;  %v1545_v24 = vld [vmem:[%s3357_s10] sm:$0x3] }
 0x3f8   : > { %1868 = vmatprep.subr.bf16.mxu1 %v1867_v20  ;;  %v1627_v20 = vld [vmem:[%s3358_s11] sm:$0x3] }
 0x3f9   : > { %v1351_v49 = vsel %vm608_vm4, %v2363_v23, %v2353_v26  ;;  %v1353_v33 = vsel %vm608_vm4, %v2364_v22, %v2358_v40  ;;  %v1650_v22 = vld [vmem:[#allocation2] sm:$0x1] }
 0x3fa   : > { %v1869_v50 = vpack.c.bf16 %v1353_v33, %v1351_v49 }
 0x3fc   : > { %1870 = vmatpush1.bf16.msra.mxu1 %v1869_v50 }
 0x3ff   : > { %1462 = vmatmul.mubr.f32.vlgmr.msra.gmra.mrb[0].mxu1 %v1195_v9  ;;  %v1204_v18 = vpop.permute.xlu1 %1203 }
 0x400   : > { %1786 = vmatprep.mubr.msk.f32.mxu1 %vm961_vm12, %v1198_v2 }
 0x403   : > { %1468 = vmatmul.mubr.f32.gmra.mrb[2].mxu1 %v1197_v52 }
 0x407   : > { %v1209_v5 = vpop.permute.xlu0 %1208 }
 0x4d2   : > { %v1463_v19 = vpop.f32.mrb[0].mxu1 }
 0x4d3   : > { %v3244_v44 = vadd.f32 %v1463_v19, %v1204_v18  ;;  %v1465_v8 = vpop.f32.mrb[1].mxu1  ;;  %v1544_v19 = vld [vmem:[%s3356_s9] sm:$0x3] }
 0x4d4   : > { %v3246_v0 = vadd.f32 %v1465_v8, %v1204_v18 }
 0x4d6   : > { %v1474_v46 = vadd.f32 %v3246_v0, %v3244_v44  ;;  %v1469_v51 = vpop.f32.mrb[2].mxu1 }
 0x4d7   : > { %v3250_v60 = vadd.f32 %v1469_v51, %v1209_v5  ;;  %v1471_v42 = vpop.f32.mrb[3].mxu1 }
 0x4d8   : > { %v1472_v58 = vadd.f32 %v1471_v42, %v1209_v5  ;;  %1475 = vadd.xlane.f32.xlu1 %v1474_v46 }
 0x4da   : > { %v1477_v16 = vadd.f32 %v1472_v58, %v3250_v60 }
 0x4dc   : > { %1478 = vadd.xlane.f32.xlu0 %v1477_v16 }
 0x565   : > { %v1476_v21 = vpop.xlane.xlu1 %1475 }
 0x566   : > { %v1481_v15 = vmul.f32 0.00390625, %v1476_v21 }
 0x568   : > { %v1485_v30 = vmul.f32 %v1483_v63, %v1481_v15 }
 0x569   : > { %v1479_v57 = vpop.xlane.xlu0 %1478 }
 0x56a   : > { %v1482_v48 = vmul.f32 0.00390625, %v1479_v57  ;;  %v1488_v35 = vsel %vm1487_vm13, %v1485_v30, 0.0 }
 0x56c   : > { %v1486_v31 = vmul.f32 %v1484_v1, %v1482_v48 }
 0x56e   : > { %v1489_v59 = vsel %vm1487_vm13, %v1486_v31, 0.0 }
 0x56f   : > { %v1490_v17 = vadd.f32 %v1489_v59, %v1488_v35 }
 0x571   : > { %v1491_v27 = vrot.slane %v1490_v17, 4 }
 0x573   : > { %v1492_v25 = vadd.f32 %v1491_v27, %v1490_v17 }
 0x575   : > { %v1493_v34 = vrot.slane %v1492_v25, 2 }
 0x577   : > { %v1494_v41 = vadd.f32 %v1493_v34, %v1492_v25 }
 0x579   : > { %v1495_v7 = vrot.slane %v1494_v41, 1 }
 0x57b   : > { %v1496_v43 = vadd.f32 %v1495_v7, %v1494_v41 }
 0x57d   : > { %v1498_v12 = vadd.f32 %v1497_v11, %v1496_v43 }
 0x57f   : > { %v1499_v54 = vmax.f32 %v1498_v12, 0.0 }
 0x581   : > { %v1505_v37 = vrot.slane %v1499_v54, %v2667_v3 }
 0x583   : > { %v1507_v6 = vmul.f32 %v1505_v37, %v1501_v36  ;;  %v1506_v29 = vmul.f32 %v1505_v37, %v1500_v53 }
 0x585   : > { %v1511_v45 = vsel %vm1487_vm13, %v1507_v6, 0.0  ;;  %v1508_v47 = vsel %vm1487_vm13, %v1506_v29, 0.0 }
 0x586   : > { %1512 = vadd.xlane.f32.xlu1 %v1511_v45  ;;  %1509 = vadd.xlane.f32.xlu0 %v1508_v47 }
 0x613   : > { %v1513_v56 = vpop.xlane.xlu1 %1512  ;;  %v1510_v10 = vpop.xlane.xlu0 %1509 }
 0x614   : > { %v1517_v40 = vadd.f32 %v1515_v13, %v1513_v56  ;;  %v1516_v14 = vadd.f32 %v1514_v62, %v1510_v10  ;;  %v2381_v56 = vld [vmem:[%s2684_s30] sm:$0xff] }
 0x616   : > { %v1788_v4 = vmul.f32 -1.442695, %v1517_v40  ;;  %v1787_v55 = vmul.f32 -1.442695, %v1516_v14  ;;  %v2382_v40 = vld [vmem:[%s2684_s30 + $0x10] sm:$0xff] }
 0x618   : > { %2365 = vpow2.f32 %v1788_v4  ;;  %v2383_v4 = vld [vmem:[%s2684_s30 + $0x8] sm:$0xff] }
 0x619   : > { %2367 = vpow2.f32 %v1787_v55 }
 0x622   : > { %v2366_v38 = vpop.eup %2365 }
 0x623   : > { %v2368_v61 = vpop.eup %2367  ;;  %v1525_v28 = vadd.f32 1.0, %v2366_v38  ;;  %v2384_v38 = vld [vmem:[%s2684_s30 + $0x18] sm:$0xff] }
 0x624   : > { %v1524_v26 = vadd.f32 1.0, %v2368_v61 }
 0x625   : > { %2369 = vrcp.f32 %v1525_v28 }
 0x626   : > { %2371 = vrcp.f32 %v1524_v26 }
 0x62f   : > { %v2370_v32 = vpop.eup %2369 }
 0x630   : > { %v2372_v39 = vpop.eup %2371  ;;  %1537 = vperm.xlu1 %2154, %v2370_v32  }
 0x631   : > { %1532 = vperm.xlu0 %2153, %v2372_v39  }
 0x634   : > { %1548 = vperm.xlu1 %2154, %v1545_v24  }
 0x635   : > { %1630 = vperm.xlu0 %2153, %v1627_v20  }
 0x638   : > { %1653 = vperm.xlu1 %2154, %v1650_v22  }
 0x6af   : > { %v1538_v23 = vpop.permute.xlu1 %1537 }
 0x6b0   : > { %v1542_v49 = vmul.f32 %v1538_v23, %v3250_v60  ;;  %v1543_v33 = vmul.f32 %v1538_v23, %v1472_v58  ;;  %v1533_v50 = vpop.permute.xlu0 %1532 }
 0x6b1   : > { %v1540_v9 = vmul.f32 %v1533_v50, %v3244_v44  ;;  %v1541_v2 = vmul.f32 %v1533_v50, %v3246_v0 }
 0x6b3   : > { %v1871_v52 = vpack.c.bf16 %v1543_v33, %v1541_v2  ;;  %v1873_v18 = vpack.c.bf16 %v1542_v49, %v1540_v9  ;;  %v1549_v8 = vpop.permute.xlu1 %1548 }
 0x6b4   : > { %v1631_v58 = vpop.permute.xlu0 %1630 }
 0x6b5   : > { %1872 = vmatprep.subr.bf16.mxu0 %v1871_v52 }
 0x6b6   : > { %1874 = vmatpush1.bf16.msra.mxu0 %v1873_v18 }
 0x6b7   : > { %v1654_v59 = vpop.permute.xlu1 %1653 }
 0x6b8   : > { %v1659_v34 = vrot.slane %v1654_v59, %v2667_v3 }
 0x6b9   : > { %1789 = vmatmul.mubr.msk.f32.vlgmr.msra.gmra.mrb[4].mxu0 %vm961_vm12, %v1544_v19 }
 0x78c   : > { %v1620_v5 = vpop.f32.mrb[4].mxu0 }
 0x78d   : > { %v1621_v46 = vadd.f32 %v1620_v5, %v1549_v8  ;;  %v1622_v51 = vpop.f32.mrb[5].mxu0 }
 0x78e   : > { %v1623_v60 = vadd.f32 %v1622_v51, %v1549_v8 }
 0x78f   : > { %v1625_v42 = vmax.f32 %v1621_v46, 0.0 }
 0x790   : > { %v1626_v44 = vmax.f32 %v1623_v60, 0.0 }
 0x791   : > { %v1633_v0 = vmul.f32 %v1631_v58, %v1625_v42 }
 0x792   : > { %v1634_v16 = vmul.f32 %v1631_v58, %v1626_v44 }
 0x793   : > { %v1636_v21 = vsel %vm1635_vm14, %v1633_v0, 0.0 }
 0x794   : > { %v1637_v15 = vrot.slane %v1636_v21, 4  ;;  %v1643_v63 = vsel %vm1635_vm14, %v1634_v16, 0.0 }
 0x795   : > { %v1644_v1 = vrot.slane %v1643_v63, 4 }
 0x796   : > { %v1638_v57 = vadd.f32 %v1637_v15, %v1636_v21 }
 0x797   : > { %v1645_v30 = vadd.f32 %v1644_v1, %v1643_v63 }
 0x798   : > { %v1639_v48 = vrot.slane %v1638_v57, 2 }
 0x799   : > { %v1646_v31 = vrot.slane %v1645_v30, 2 }
 0x79a   : > { %v1640_v35 = vadd.f32 %v1639_v48, %v1638_v57 }
 0x79b   : > { %v1647_v17 = vadd.f32 %v1646_v31, %v1645_v30 }
 0x79c   : > { %v1641_v27 = vrot.slane %v1640_v35, 1 }
 0x79d   : > { %v1648_v25 = vrot.slane %v1647_v17, 1 }
 0x79e   : > { %v1642_v41 = vadd.f32 %v1641_v27, %v1640_v35 }
 0x79f   : > { %v1649_v7 = vadd.f32 %v1648_v25, %v1647_v17 }
 0x7a0   : > { %v1660_v11 = vadd.f32 %v1659_v34, %v1642_v41 }
 0x7a1   : > { %v1661_v43 = vadd.f32 %v1659_v34, %v1649_v7 }
 0x7a2   : > { %v1790_v12 = vmul.f32 -1.442695, %v1660_v11 }
 0x7a3   : > { %v1791_v54 = vmul.f32 -1.442695, %v1661_v43 }
 0x7a4   : > { %2373 = vpow2.f32 %v1790_v12 }
 0x7a5   : > { %2375 = vpow2.f32 %v1791_v54 }
 0x7ae   : > { %v2374_v36 = vpop.eup %2373 }
 0x7af   : > { %v2376_v53 = vpop.eup %2375  ;;  %v1668_v37 = vadd.f32 1.0, %v2374_v36 }
 0x7b0   : > { %v1669_v6 = vadd.f32 1.0, %v2376_v53 }
 0x7b1   : > { %2377 = vrcp.f32 %v1668_v37 }
 0x7b2   : > { %2379 = vrcp.f32 %v1669_v6 }
 0x7bb   : > { %v2378_v3 = vpop.eup %2377 }
 0x7bc   : > { %v2380_v29 = vpop.eup %2379  ;;  %v1674_v45 = vmul.f32 %v2378_v3, %v1540_v9  ;;  %v1676_v47 = vmul.f32 %v2378_v3, %v1542_v49 }
 0x7bd   : > { %v1675_v13 = vmul.f32 %v2380_v29, %v1541_v2  ;;  %v1677_v62 = vmul.f32 %v2380_v29, %v1543_v33 }
 0x7be   : > { %v1678_v10 = vadd.f32 %v2381_v56, %v1674_v45  ;;  %v1680_v14 = vadd.f32 %v2382_v40, %v1676_v47 }
 0x7bf   : > { %v1679_v55 = vadd.f32 %v2383_v4, %v1675_v13  ;;  %v1681_v61 = vadd.f32 %v2384_v38, %v1677_v62 }
 0x7c0   : > { %1682 = vst [vmem:[%s504_s19] sm:$0xff] %v1678_v10  ;;  %1684 = vst [vmem:[%s504_s19 + $0x10] sm:$0xff] %v1680_v14 }
 0x7c1   : > { %1683 = vst [vmem:[%s504_s19 + $0x8] sm:$0xff] %v1679_v55  ;;  %1685 = vst [vmem:[%s504_s19 + $0x18] sm:$0xff] %v1681_v61 }
 0x7c2   : > { %2426 = shalt.err (!%p2423_p7)
}
 0x7c3   : > { %s2427_s30 = scalar_lea.hbm %s3300_s28, 512  ;;  %s2431_s17 = scalar_lea.hbm %s3362_s15, 1024 }
 0x7c4   : > { %p2428_p8 = scmp.ne.s32.totalorder %s3300_s28, %s2427_s30  ;;  %p2432_p1 = scmp.lt.u32.totalorder %s3300_s28, %s3362_s15 }
 0x7c5   : > { %p2433_p0 = scmp.lt.u32.totalorder %s2431_s17, %s2427_s30  ;;  %p2435_p6 = scmp.lt.u32.totalorder %s2427_s30, %s3300_s28 }
 0x7c6   : > { %p2429_p11 = pnand %p2428_p8, %p3396_p9 }
 0x7c7   : > { %p2434_p5 = por %p2433_p0, %p2432_p1 }
 0x7c8   : > { %p2430_p13 = pneg %p2429_p11 }
 0x7c9   : > { %p2436_p10 = por %p2435_p6, %p2434_p5 }
 0x7cb   : > { %p2437_p12 = pnand %p2436_p10, %p2430_p13 }
 0x7cd   : > { %2440 = shalt.err (!%p2437_p12)
}
 0x7ce   : > { %s2499_s24 = smov 256   ;;  %s2500_s27 = smov 16  }
 0x7cf   : > { %1879 = dma.vmem_to_hbm [thread:$0]  (%p3396_p9), %s3302_s22, 512, %s3300_s28, %s3306_s12, %s2499_s24, %s2499_s24, %s2500_s27  }
 0x7d0 PF: > { %s3397_s18 = sld [smem:[#allocation12_spill]]  ;;  %p1891_p2 = scmp.ge.s32.totalorder %s2479_s23, 2 }
 0x7d1   : > { %s1715_s25 = sand.u32 1, %s2467_s20  }
 0x7d2   : > { %s1716_s30 = scalar_lea.sflag [#allocation5], %s1715_s25 }
 0x7d6   : > { %p3398_p3 = scmp.ne.s32.totalorder %s3397_s18, 0 }
 0x7d8   : > { %p1886_p4 = pnand %p1891_p2, %p3398_p3 }
 0x7da   : > { %2462 = dma.done.wait (!%p1886_p4), %s1716_s30, 512  }
 0x7db   : > { %2464 = vsyncadd (!%p1886_p4), %s1716_s30, 4294966784  ;;  %s3399_s23 = sld [smem:[#allocation10_spill]]  ;;  %s3400_s19 = sld [smem:[#allocation9_spill]] }
 0x7dc   : > { %s3401_s22 = sld [smem:[#allocation11_spill]]  ;;  %s3402_s20 = smov %s2471_s21 }
 0x7e1   : > { %p28_p7 = scmp.ge.s32.totalorder %s3399_s23, 4   ;;  %s3403_s21 = smov %s3400_s19 }
 0x7e3   :  { %30 = sbr.rel (!%p28_p7) target bundleno = 7 (0x7), region = 120 }
 0x7ea   :  { %1721 = vsyncpa [#allocation4], 1 }
 0x7eb   :  { %1723 = vsyncpa [#allocation4 + $0x1], 1 }
 0x7ec   :  { %1724 = vsyncpa [#allocation5], 1 }
 0x7ed   :  { %1726 = vsyncpa [#allocation5 + $0x1], 1 }

</bundles_post_ra>
